<compile_context>
chip_gen: v6e
topology: v6e:2x2x1
jax: 0.10.0
libtpu: 0.0.40
codegen_flags: <defaults>
</compile_context>

<pallas_src>
import numpy as np
import jax
import jax.numpy as jnp
from jax.experimental import pallas as pl
from jax.experimental.pallas import tpu as pltpu

C_PAD = 128                     # lane group width per sequence position
HI = jax.lax.Precision.HIGHEST  # only used by the pure-JAX reference


# ---------------------------------------------------------------------------
# Pallas kernel: entire Cnn1d forward (conv1..conv4 + fc + sigmoid), one call
# ---------------------------------------------------------------------------
def cnn1d_kernel(x_ref, w1_ref, s1_ref, w2_ref, s2_ref, w3_ref, s3_ref,
                 wfc_ref, bfc_ref, out_ref):
    f32, bf16 = jnp.float32, jnp.bfloat16

    x = x_ref[...]                                                     # (BT, 640) bf16

    # conv1 + folded BN: one GEMM. Output columns are ordered [even pos | odd pos].
    y1 = jnp.dot(x, w1_ref[...], preferred_element_type=f32) + s1_ref[...]        # (BT, 1024)
    # maxpool1(2, stride=2) fused with ReLU:  relu(max(even, odd))
    h1 = jnp.maximum(jnp.maximum(y1[:, :512], y1[:, 512:]), 0.0)                  # (BT, 512)

    # conv2 + folded BN
    y2 = jnp.dot(h1.astype(bf16), w2_ref[...], preferred_element_type=f32) + s2_ref[...]  # (BT, 384)
    # maxpool2(2, stride=1) + ReLU: overlapping 128-aligned lane slices
    h2 = jnp.maximum(jnp.maximum(y2[:, 0:256], y2[:, 128:384]), 0.0)              # (BT, 256)

    # conv3 + folded BN + ReLU.  conv4 = ReLU (idempotent) + Dropout -> identity in eval.
    y3 = jnp.dot(h2.astype(bf16), w3_ref[...], preferred_element_type=f32) + s3_ref[...]  # (BT, 256)
    h3 = jnp.maximum(y3, 0.0)

    # fc (18 -> 7, permuted into the lane layout by the wrapper) + sigmoid
    logit = jnp.dot(h3.astype(bf16), wfc_ref[...], preferred_element_type=f32) + bfc_ref[...]
    out_ref[...] = jax.nn.sigmoid(logit)                                          # (BT, 128)


def run_pallas(x1, packed, b_tile):
    """x1: (Bp, 640) bf16 with Bp a multiple of b_tile; packed: tuple of weight slabs."""
    bp = x1.shape[0]
    grid = (bp // b_tile,)
    in_specs = [pl.BlockSpec((b_tile, x1.shape[1]), lambda i: (i, 0))]
    in_specs += [pl.BlockSpec(w.shape, lambda i: (0, 0)) for w in packed]
    return pl.pallas_call(
        cnn1d_kernel,
        out_shape=jax.ShapeDtypeStruct((bp, C_PAD), jnp.float32),
        grid=grid,
        in_specs=in_specs,
        out_specs=pl.BlockSpec((b_tile, C_PAD), lambda i: (i, 0)),
        compiler_params=pltpu.CompilerParams(
            dimension_semantics=("parallel",),       # use both TCs on v7x at large batch
            vmem_limit_bytes=32 * 1024 * 1024,       # explicit; footprint is only a few MiB
        ),
    )(x1, *packed)


# ---------------------------------------------------------------------------
# Wrapper-side packing: BN folding + conv-as-GEMM weight slabs (runs once)
# ---------------------------------------------------------------------------
def _fold_bn(w, b, bn, eps=1e-5):
    gamma, beta, mean, var = [np.asarray(a, np.float32) for a in bn]
    w = np.asarray(w, np.float32)
    b = np.asarray(b, np.float32)
    scale = gamma / np.sqrt(var + eps)
    shift = beta + scale * (b - mean)
    return w * scale[:, None, None], shift


def pack_conv1(w, b, bn):
    # conv1: k=2, stride=1, pad=1, L_in=8 -> outputs 0..8; output 8 is dropped by maxpool1.
    # Input lanes: l_in*80 + c_in.  Output columns: [even positions | odd positions] blocks
    # of 128 lanes each (pool1 fold), i.e. h1 lane g*128+c = pooled position g, channel c.
    wf, shift = _fold_bn(w, b, bn)
    cout, cin, _ = wf.shape                                  # 81, 80
    W = np.zeros((8 * cin, 8 * C_PAD), np.float32)
    S = np.zeros((1, 8 * C_PAD), np.float32)
    for l_out in range(8):
        g = (l_out // 2) + (0 if l_out % 2 == 0 else 4)
        col = g * C_PAD
        S[0, col:col + cout] = shift
        for k in range(2):
            l_in = l_out + k - 1                             # padded pos -> real pos
            if 0 <= l_in < 8:
                W[l_in * cin:(l_in + 1) * cin, col:col + cout] = wf[:, :, k].T
    return W, S


def pack_conv_s2(w, b, bn, l_in_count, l_out_count):
    # stride-2, pad-1 conv as GEMM: input lane = l_in*128 + c_in, output lane = l_out*128 + c_out.
    # Zero padding is embedded (padded taps simply have no weight rows).
    wf, shift = _fold_bn(w, b, bn)
    cout, cin, _ = wf.shape
    W = np.zeros((l_in_count * C_PAD, l_out_count * C_PAD), np.float32)
    S = np.zeros((1, l_out_count * C_PAD), np.float32)
    for l_out in range(l_out_count):
        col = l_out * C_PAD
        S[0, col:col + cout] = shift
        for k in range(2):
            l_in = 2 * l_out + k - 1
            if 0 <= l_in < l_in_count:
                W[l_in * C_PAD:l_in * C_PAD + cin, col:col + cout] = wf[:, :, k].T
    return W, S


def pack_fc(wf_lin, bf_lin):
    # PyTorch flatten index = c*2 + l (9 channels, 2 positions); kernel h3 lane = l*128 + c.
    wf_lin = np.asarray(wf_lin, np.float32)
    bf_lin = np.asarray(bf_lin, np.float32)
    W = np.zeros((2 * C_PAD, C_PAD), np.float32)
    B = np.zeros((1, C_PAD), np.float32)
    for l in range(2):
        for c in range(9):
            W[l * C_PAD + c, :7] = wf_lin[:, c * 2 + l]
    B[0, :7] = bf_lin
    return W, B


def pack_params(params):
    (w1, b1, bn1, w2, b2, bn2, w3, b3, bn3, wf, bf) = params
    w1p, s1 = pack_conv1(w1, b1, bn1)
    w2p, s2 = pack_conv_s2(w2, b2, bn2, l_in_count=4, l_out_count=3)
    w3p, s3 = pack_conv_s2(w3, b3, bn3, l_in_count=2, l_out_count=2)
    wfp, bfp = pack_fc(wf, bf)
    bfl = lambda a: jnp.asarray(a, jnp.bfloat16)   # matmul operands -> bf16 (single MXU pass)
    f32 = lambda a: jnp.asarray(a, jnp.float32)    # epilogue shifts stay f32
    return (bfl(w1p), f32(s1), bfl(w2p), f32(s2), bfl(w3p), f32(s3), bfl(wfp), f32(bfp))


def make_forward(params, b_tile_max=128):
    packed = pack_params(params)                   # hoisted: packing runs exactly once

    @jax.jit
    def _forward(x, packed):
        B = x.shape[0]
        b_tile = min(b_tile_max, ((B + 7) // 8) * 8)          # rows per tile, multiple of 8
        bp = ((B + b_tile - 1) // b_tile) * b_tile
        # channels-last, position-major lanes: (B, 80, 8) -> (B, 8, 80) -> (B, 640)
        x1 = jnp.transpose(x, (0, 2, 1)).reshape(B, -1).astype(jnp.bfloat16)
        if bp != B:
            x1 = jnp.pad(x1, ((0, bp - B), (0, 0)))
        out = run_pallas(x1, packed, b_tile)
        return out[:B, :7]

    return lambda x: _forward(x, packed)


# ---------------------------------------------------------------------------
# Deterministic PyTorch-shaped parameter init
# ---------------------------------------------------------------------------
def conv_init(key, cin, cout, ksz=2):
    k1, k2 = jax.random.split(key)
    bound = 1.0 / np.sqrt(cin * ksz)
    w = jax.random.uniform(k1, (cout, cin, ksz), jnp.float32, -bound, bound)
    b = jax.random.uniform(k2, (cout,), jnp.float32, -bound, bound)
    return w, b


def bn_init(key, c):
    k1, k2, k3, k4 = jax.random.split(key, 4)
    gamma = jax.random.uniform(k1, (c,), jnp.float32, 0.5, 1.5)
    beta = jax.random.uniform(k2, (c,), jnp.float32, -0.5, 0.5)
    mean = jax.random.uniform(k3, (c,), jnp.float32, -0.5, 0.5)
    var = jax.random.uniform(k4, (c,), jnp.float32, 0.5, 1.5)
    return gamma, beta, mean, var


def linear_init(key, fin, fout):
    k1, k2 = jax.random.split(key)
    bound = 1.0 / np.sqrt(fin)
    w = jax.random.uniform(k1, (fout, fin), jnp.float32, -bound, bound)
    b = jax.random.uniform(k2, (fout,), jnp.float32, -bound, bound)
    return w, b


# ---------------------------------------------------------------------------
# Pure-JAX (XLA, f32/HIGHEST) reference in PyTorch NCW layout
# ---------------------------------------------------------------------------
def ref_forward(x, params):
    (w1, b1, bn1, w2, b2, bn2, w3, b3, bn3, wf, bf) = params

    def conv1d(x, w, b, stride, pad):
        xp = jnp.pad(x, ((0, 0), (0, 0), (pad, pad)))
        k = w.shape[-1]
        lout = (xp.shape[-1] - k) // stride + 1
        cols = jnp.stack([xp[:, :, i:i + stride * lout:stride] for i in range(k)], axis=-1)
        return jnp.einsum('bclk,ock->bol', cols, w, precision=HI) + b[None, :, None]

    def bn(x, g, bt, m, v, eps=1e-5):
        return (x - m[None, :, None]) * (g / jnp.sqrt(v + eps))[None, :, None] + bt[None, :, None]

    def mp(x, k, s):
        lout = (x.shape[-1] - k) // s + 1
        return jnp.max(jnp.stack([x[:, :, i:i + s * lout:s] for i in range(k)], axis=-1), axis=-1)

    h = mp(jax.nn.relu(bn(conv1d(x, w1, b1, 1, 1), *bn1)), 2, 2)
    h = mp(jax.nn.relu(bn(conv1d(h, w2, b2, 2, 1), *bn2)), 2, 1)
    h = jax.nn.relu(bn(conv1d(h, w3, b3, 2, 1), *bn3))
    h = jax.nn.relu(h)                                  # conv4 ReLU; Dropout identity (eval)
    flat = h.reshape(x.shape[0], -1)                    # (B, 18)
    return jax.nn.sigmoid(jnp.dot(flat, wf.T, precision=HI) + bf)


if __name__ == "__main__":
    key = jax.random.PRNGKey(0)
    keys = jax.random.split(key, 8)

    params = (
        *conv_init(keys[0], 80, 81), bn_init(keys[1], 81),
        *conv_init(keys[2], 81, 27), bn_init(keys[3], 27),
        *conv_init(keys[4], 27, 9), bn_init(keys[5], 9),
        *linear_init(keys[6], 18, 7),
    )

    # Input in PyTorch NCW layout: (batch=2, channels=80, length=8) -> fc sees 9*2=18 features
    x = jax.random.normal(keys[7], (2, 80, 8), jnp.float32)

    forward = make_forward(params)
    out = jax.block_until_ready(forward(x))
    ref = jax.block_until_ready(ref_forward(x, params))

    assert out.shape == (2, 7), out.shape
    # Kernel uses bf16 MXU operands (per perf review); reference is f32/HIGHEST, hence the
    # loosened-but-still-bug-catching tolerance.
    if not np.allclose(np.asarray(out), np.asarray(ref), atol=2.5e-2, rtol=0.0):
        raise AssertionError(
            f"mismatch vs reference, max abs diff = "
            f"{np.max(np.abs(np.asarray(out) - np.asarray(ref)))}")
    print("KERNEL_OK")
</pallas_src>

<mosaic_0001>
module attributes {stable_mosaic.version = 11 : i64} {
  func.func @cnn1d_kernel(%arg0: i32, %arg1: memref<8x640xbf16, #tpu.memory_space<vmem>>, %arg2: memref<640x1024xbf16, #tpu.memory_space<vmem>>, %arg3: memref<1x1024xf32, #tpu.memory_space<vmem>>, %arg4: memref<512x384xbf16, #tpu.memory_space<vmem>>, %arg5: memref<1x384xf32, #tpu.memory_space<vmem>>, %arg6: memref<256x256xbf16, #tpu.memory_space<vmem>>, %arg7: memref<1x256xf32, #tpu.memory_space<vmem>>, %arg8: memref<256x128xbf16, #tpu.memory_space<vmem>>, %arg9: memref<1x128xf32, #tpu.memory_space<vmem>>, %arg10: memref<8x128xf32, #tpu.memory_space<vmem>>) attributes {dimension_semantics = [#tpu.dimension_semantics<parallel>], iteration_bounds = array<i64: 1>, scalar_prefetch = 0 : i64, scratch_operands = 0 : i64, tpu.core_type = #tpu.core_type<tc>, window_params = [{transform_indices = @transform_0, window_bounds = array<i64: 8, 640>}, {pipeline_mode = #tpu.pipeline_mode<synchronous>, transform_indices = @transform_1, window_bounds = array<i64: 640, 1024>}, {pipeline_mode = #tpu.pipeline_mode<synchronous>, transform_indices = @transform_2, window_bounds = array<i64: 1, 1024>}, {pipeline_mode = #tpu.pipeline_mode<synchronous>, transform_indices = @transform_3, window_bounds = array<i64: 512, 384>}, {pipeline_mode = #tpu.pipeline_mode<synchronous>, transform_indices = @transform_4, window_bounds = array<i64: 1, 384>}, {pipeline_mode = #tpu.pipeline_mode<synchronous>, transform_indices = @transform_5, window_bounds = array<i64: 256, 256>}, {pipeline_mode = #tpu.pipeline_mode<synchronous>, transform_indices = @transform_6, window_bounds = array<i64: 1, 256>}, {pipeline_mode = #tpu.pipeline_mode<synchronous>, transform_indices = @transform_7, window_bounds = array<i64: 256, 128>}, {pipeline_mode = #tpu.pipeline_mode<synchronous>, transform_indices = @transform_8, window_bounds = array<i64: 1, 128>}, {transform_indices = @transform_9, window_bounds = array<i64: 8, 128>}]} {
    %c0 = arith.constant 0 : index
    %c0_0 = arith.constant 0 : index
    %0 = vector.load %arg1[%c0, %c0_0] : memref<8x640xbf16, #tpu.memory_space<vmem>>, vector<8x640xbf16>
    %c0_1 = arith.constant 0 : index
    %c0_2 = arith.constant 0 : index
    %1 = vector.load %arg2[%c0_1, %c0_2] : memref<640x1024xbf16, #tpu.memory_space<vmem>>, vector<640x1024xbf16>
    %cst = arith.constant dense<0.000000e+00> : vector<8x1024xf32>
    %2 = tpu.matmul %0, %1, %cst {dimension_numbers = #tpu.dot_dimension_numbers<[1], [0], [0], [1], [0, 0, 1, 1], [], []>} : vector<8x640xbf16>, vector<640x1024xbf16>, vector<8x1024xf32> -> vector<8x1024xf32>
    %c0_3 = arith.constant 0 : index
    %c0_4 = arith.constant 0 : index
    %3 = vector.load %arg3[%c0_3, %c0_4] : memref<1x1024xf32, #tpu.memory_space<vmem>>, vector<1x1024xf32>
    %4 = vector.broadcast %3 : vector<1x1024xf32> to vector<8x1024xf32>
    %5 = arith.addf %2, %4 : vector<8x1024xf32>
    %6 = vector.extract_strided_slice %5 {offsets = [0, 0], sizes = [8, 512], strides = [1, 1]} : vector<8x1024xf32> to vector<8x512xf32>
    %7 = vector.extract_strided_slice %5 {offsets = [0, 512], sizes = [8, 512], strides = [1, 1]} : vector<8x1024xf32> to vector<8x512xf32>
    %8 = arith.maximumf %6, %7 : vector<8x512xf32>
    %cst_5 = arith.constant 0.000000e+00 : f32
    %9 = vector.broadcast %cst_5 : f32 to vector<8x512xf32>
    %10 = arith.maximumf %8, %9 : vector<8x512xf32>
    %11 = arith.truncf %10 : vector<8x512xf32> to vector<8x512xbf16>
    %c0_6 = arith.constant 0 : index
    %c0_7 = arith.constant 0 : index
    %12 = vector.load %arg4[%c0_6, %c0_7] : memref<512x384xbf16, #tpu.memory_space<vmem>>, vector<512x384xbf16>
    %cst_8 = arith.constant dense<0.000000e+00> : vector<8x384xf32>
    %13 = tpu.matmul %11, %12, %cst_8 {dimension_numbers = #tpu.dot_dimension_numbers<[1], [0], [0], [1], [0, 0, 1, 1], [], []>} : vector<8x512xbf16>, vector<512x384xbf16>, vector<8x384xf32> -> vector<8x384xf32>
    %c0_9 = arith.constant 0 : index
    %c0_10 = arith.constant 0 : index
    %14 = vector.load %arg5[%c0_9, %c0_10] : memref<1x384xf32, #tpu.memory_space<vmem>>, vector<1x384xf32>
    %15 = vector.broadcast %14 : vector<1x384xf32> to vector<8x384xf32>
    %16 = arith.addf %13, %15 : vector<8x384xf32>
    %17 = vector.extract_strided_slice %16 {offsets = [0, 0], sizes = [8, 256], strides = [1, 1]} : vector<8x384xf32> to vector<8x256xf32>
    %18 = vector.extract_strided_slice %16 {offsets = [0, 128], sizes = [8, 256], strides = [1, 1]} : vector<8x384xf32> to vector<8x256xf32>
    %19 = arith.maximumf %17, %18 : vector<8x256xf32>
    %cst_11 = arith.constant 0.000000e+00 : f32
    %20 = vector.broadcast %cst_11 : f32 to vector<8x256xf32>
    %21 = arith.maximumf %19, %20 : vector<8x256xf32>
    %22 = arith.truncf %21 : vector<8x256xf32> to vector<8x256xbf16>
    %c0_12 = arith.constant 0 : index
    %c0_13 = arith.constant 0 : index
    %23 = vector.load %arg6[%c0_12, %c0_13] : memref<256x256xbf16, #tpu.memory_space<vmem>>, vector<256x256xbf16>
    %cst_14 = arith.constant dense<0.000000e+00> : vector<8x256xf32>
    %24 = tpu.matmul %22, %23, %cst_14 {dimension_numbers = #tpu.dot_dimension_numbers<[1], [0], [0], [1], [0, 0, 1, 1], [], []>} : vector<8x256xbf16>, vector<256x256xbf16>, vector<8x256xf32> -> vector<8x256xf32>
    %c0_15 = arith.constant 0 : index
    %c0_16 = arith.constant 0 : index
    %25 = vector.load %arg7[%c0_15, %c0_16] : memref<1x256xf32, #tpu.memory_space<vmem>>, vector<1x256xf32>
    %26 = vector.broadcast %25 : vector<1x256xf32> to vector<8x256xf32>
    %27 = arith.addf %24, %26 : vector<8x256xf32>
    %cst_17 = arith.constant 0.000000e+00 : f32
    %28 = vector.broadcast %cst_17 : f32 to vector<8x256xf32>
    %29 = arith.maximumf %27, %28 : vector<8x256xf32>
    %30 = arith.truncf %29 : vector<8x256xf32> to vector<8x256xbf16>
    %c0_18 = arith.constant 0 : index
    %c0_19 = arith.constant 0 : index
    %31 = vector.load %arg8[%c0_18, %c0_19] : memref<256x128xbf16, #tpu.memory_space<vmem>>, vector<256x128xbf16>
    %cst_20 = arith.constant dense<0.000000e+00> : vector<8x128xf32>
    %32 = tpu.matmul %30, %31, %cst_20 {dimension_numbers = #tpu.dot_dimension_numbers<[1], [0], [0], [1], [0, 0, 1, 1], [], []>} : vector<8x256xbf16>, vector<256x128xbf16>, vector<8x128xf32> -> vector<8x128xf32>
    %c0_21 = arith.constant 0 : index
    %c0_22 = arith.constant 0 : index
    %33 = vector.load %arg9[%c0_21, %c0_22] : memref<1x128xf32, #tpu.memory_space<vmem>>, vector<1x128xf32>
    %34 = vector.broadcast %33 : vector<1x128xf32> to vector<8x128xf32>
    %35 = arith.addf %32, %34 : vector<8x128xf32>
    %36 = arith.negf %35 : vector<8x128xf32>
    %37 = math.exp %36 : vector<8x128xf32>
    %cst_23 = arith.constant 1.000000e+00 : f32
    %38 = vector.broadcast %cst_23 : f32 to vector<8x128xf32>
    %39 = arith.addf %38, %37 : vector<8x128xf32>
    %40 = arith.divf %38, %39 : vector<8x128xf32>
    %c0_24 = arith.constant 0 : index
    %c0_25 = arith.constant 0 : index
    %41 = vector.load %arg10[%c0_24, %c0_25] : memref<8x128xf32, #tpu.memory_space<vmem>>, vector<8x128xf32>
    tpu.vector_store %arg10[%c0_24, %c0_25], %40 {strides = array<i32>} : memref<8x128xf32, #tpu.memory_space<vmem>>, vector<8x128xf32>,
    return
  }
  func.func @transform_0(%arg0: i32) -> (i32, i32) {
    %c0_i32 = arith.constant 0 : i32
    %c0_i32_0 = arith.constant 0 : i32
    return %arg0, %c0_i32 : i32, i32
  }
  func.func @transform_1(%arg0: i32) -> (i32, i32) {
    %c0_i32 = arith.constant 0 : i32
    %c0_i32_0 = arith.constant 0 : i32
    %c0_i32_1 = arith.constant 0 : i32
    return %c0_i32, %c0_i32_0 : i32, i32
  }
  func.func @transform_2(%arg0: i32) -> (i32, i32) {
    %c0_i32 = arith.constant 0 : i32
    %c0_i32_0 = arith.constant 0 : i32
    %c0_i32_1 = arith.constant 0 : i32
    return %c0_i32, %c0_i32_0 : i32, i32
  }
  func.func @transform_3(%arg0: i32) -> (i32, i32) {
    %c0_i32 = arith.constant 0 : i32
    %c0_i32_0 = arith.constant 0 : i32
    %c0_i32_1 = arith.constant 0 : i32
    return %c0_i32, %c0_i32_0 : i32, i32
  }
  func.func @transform_4(%arg0: i32) -> (i32, i32) {
    %c0_i32 = arith.constant 0 : i32
    %c0_i32_0 = arith.constant 0 : i32
    %c0_i32_1 = arith.constant 0 : i32
    return %c0_i32, %c0_i32_0 : i32, i32
  }
  func.func @transform_5(%arg0: i32) -> (i32, i32) {
    %c0_i32 = arith.constant 0 : i32
    %c0_i32_0 = arith.constant 0 : i32
    %c0_i32_1 = arith.constant 0 : i32
    return %c0_i32, %c0_i32_0 : i32, i32
  }
  func.func @transform_6(%arg0: i32) -> (i32, i32) {
    %c0_i32 = arith.constant 0 : i32
    %c0_i32_0 = arith.constant 0 : i32
    %c0_i32_1 = arith.constant 0 : i32
    return %c0_i32, %c0_i32_0 : i32, i32
  }
  func.func @transform_7(%arg0: i32) -> (i32, i32) {
    %c0_i32 = arith.constant 0 : i32
    %c0_i32_0 = arith.constant 0 : i32
    %c0_i32_1 = arith.constant 0 : i32
    return %c0_i32, %c0_i32_0 : i32, i32
  }
  func.func @transform_8(%arg0: i32) -> (i32, i32) {
    %c0_i32 = arith.constant 0 : i32
    %c0_i32_0 = arith.constant 0 : i32
    %c0_i32_1 = arith.constant 0 : i32
    return %c0_i32, %c0_i32_0 : i32, i32
  }
  func.func @transform_9(%arg0: i32) -> (i32, i32) {
    %c0_i32 = arith.constant 0 : i32
    %c0_i32_0 = arith.constant 0 : i32
    return %arg0, %c0_i32 : i32, i32
  }
}

</mosaic_0001>

<bundles_post_ra>
// kernel: _forward.1
= control target key start
LH: loop header
LB: loop body
LE: loop exit
PB: predicated region body
PF: predicated region fallthrough
CT: control target
= control target key end

     0   :  { %14 = vsyncpa [#allocation3], 0  ;;  %s5018_s0 = inlined_call_operand.vmem [shape: bf16[8,640], index: 0, kind: input, shape index: {}]   ;;  %s5019_s1 = inlined_call_operand.hbm [shape: bf16[640,1024], index: 1, kind: input, shape index: {}]   ;;  %s5020_s2 = inlined_call_operand.hbm [shape: f32[1,1024], index: 2, kind: input, shape index: {}]   ;;  %s5021_s3 = inlined_call_operand.hbm [shape: bf16[512,384], index: 3, kind: input, shape index: {}]   ;;  %s5022_s4 = inlined_call_operand.hbm [shape: f32[1,384], index: 4, kind: input, shape index: {}]   ;;  %s5023_s5 = inlined_call_operand.hbm [shape: bf16[256,256], index: 5, kind: input, shape index: {}]   ;;  %s5024_s6 = inlined_call_operand.hbm [shape: f32[1,256], index: 6, kind: input, shape index: {}]   ;;  %s5025_s7 = inlined_call_operand.hbm [shape: bf16[256,128], index: 7, kind: input, shape index: {}]   ;;  %s5026_s8 = inlined_call_operand.hbm [shape: f32[1,128], index: 8, kind: input, shape index: {}]   ;;  %s5027_s9 = inlined_call_operand.vmem [shape: f32[8,128], index: 9, kind: output, shape index: {}]  }
   0x1   :  { %15 = vsyncpa [#allocation5], 0 }
   0x2   :  { %16 = vsyncpa [#allocation8], 0 }
   0x3   :  { %17 = vsyncpa [#allocation11], 0 }
   0x4   :  { %18 = vsyncpa [#allocation14], 0  ;;  %s4812_s30 = smov [#allocation4]   ;;  %s4813_s11 = smov [#allocation7]  }
   0x5   :  { %s39_s10 = sshll.u32 %s4812_s30, 4  ;;  %s61_s12 = sshll.u32 %s4813_s11, 4  ;;  %s40_s10 = int_to_ptr.vmem [resolvable:$true] %s39_s10  ;;  %s62_s12 = int_to_ptr.vmem [resolvable:$true] %s61_s12 }
   0x6   :  { %s4650_s13 = scalar_lea.vmem %s40_s10, 128  ;;  %p4655_p1 = scmp.lt.s32.totalorder %s40_s10, %s40_s10 }
   0x7   :  { %p4651_p0 = scmp.ne.s32.totalorder %s40_s10, %s4650_s13  ;;  %p4656_p2 = scmp.lt.s32.totalorder %s4650_s13, %s4650_s13 }
   0x9   :  { %p4657_p3 = por %p4656_p2, %p4655_p1 }
   0xb   :  { %p4658_p4 = pnand %p4657_p3, %p4651_p0 }
   0xd   :  { %4661 = shalt.err (!%p4658_p4)
}
   0xe   :  { %42 = dma.hbm_to_vmem [thread:$0]  %s5020_s2, 128, %s40_s10, [#allocation5]  }
   0xf   :  { %s4670_s16 = scalar_lea.vmem %s62_s12, 48  ;;  %s4674_s17 = scalar_lea.vmem %s62_s12, 64 }
  0x10   :  { %p4671_p5 = scmp.ne.s32.totalorder %s62_s12, %s4670_s16  ;;  %p4675_p6 = scmp.lt.s32.totalorder %s62_s12, %s62_s12 }
  0x11   :  { %p4676_p7 = scmp.lt.s32.totalorder %s4674_s17, %s4670_s16 }
  0x13   :  { %p4677_p8 = por %p4676_p7, %p4675_p6 }
  0x15   :  { %p4678_p9 = pnand %p4677_p8, %p4671_p5 }
  0x17   :  { %4681 = shalt.err (!%p4678_p9)
}
  0x18   :  { %64 = dma.hbm_to_vmem [thread:$0]  %s5022_s4, 48, %s62_s12, [#allocation8]  }
  0x19   :  { %s4814_s20 = smov [#allocation10]   ;;  %s4815_s22 = smov [#allocation2]  }
  0x1a   :  { %s83_s21 = sshll.u32 %s4814_s20, 4  ;;  %s26_s23 = sshll.u32 %s4815_s22, 4  ;;  %s84_s21 = int_to_ptr.vmem [resolvable:$true] %s83_s21  ;;  %s27_s23 = int_to_ptr.vmem [resolvable:$true] %s26_s23 }
  0x1b   :  { %s4690_s24 = scalar_lea.vmem %s84_s21, 32  ;;  %p4695_p11 = scmp.lt.s32.totalorder %s84_s21, %s84_s21 }
  0x1c   :  { %p4691_p10 = scmp.ne.s32.totalorder %s84_s21, %s4690_s24  ;;  %p4696_p12 = scmp.lt.s32.totalorder %s4690_s24, %s4690_s24 }
  0x1e   :  { %p4697_p13 = por %p4696_p12, %p4695_p11 }
  0x20   :  { %p4698_p0 = pnand %p4697_p13, %p4691_p10 }
  0x22   :  { %4701 = shalt.err (!%p4698_p0)
}
  0x23   :  { %86 = dma.hbm_to_vmem [thread:$0]  %s5024_s6, 32, %s84_s21, [#allocation11]  }
  0x24   :  { %s4710_s26 = scalar_lea.vmem %s27_s23, 40960  ;;  %p4715_p2 = scmp.lt.s32.totalorder %s27_s23, %s27_s23 }
  0x25   :  { %p4711_p1 = scmp.ne.s32.totalorder %s27_s23, %s4710_s26  ;;  %p4716_p3 = scmp.lt.s32.totalorder %s4710_s26, %s4710_s26 }
  0x27   :  { %p4717_p4 = por %p4716_p3, %p4715_p2 }
  0x29   :  { %p4718_p5 = pnand %p4717_p4, %p4711_p1 }
  0x2b   :  { %4721 = shalt.err (!%p4718_p5)
}
  0x2c   :  { %s4816_s4 = smov 512   ;;  %s4817_s27 = smov 32  }
  0x2d   :  { %32 = dma.hbm_to_vmem [thread:$0]  %s5019_s1, 40960, %s27_s23, [#allocation3], %s4816_s4, %s4816_s4, %s4817_s27  }
  0x2e   :  { %s4818_s30 = smov [#allocation6]  }
  0x2f   :  { %s48_s10 = sshll.u32 %s4818_s30, 4  ;;  %s49_s10 = int_to_ptr.vmem [resolvable:$true] %s48_s10 }
  0x30   :  { %s4730_s11 = scalar_lea.vmem %s49_s10, 12288  ;;  %p4735_p7 = scmp.lt.s32.totalorder %s49_s10, %s49_s10 }
  0x31   :  { %p4731_p6 = scmp.ne.s32.totalorder %s49_s10, %s4730_s11  ;;  %p4736_p8 = scmp.lt.s32.totalorder %s4730_s11, %s4730_s11 }
  0x33   :  { %p4737_p9 = por %p4736_p8, %p4735_p7 }
  0x35   :  { %p4738_p10 = pnand %p4737_p9, %p4731_p6 }
  0x37   :  { %4741 = shalt.err (!%p4738_p10)
}
  0x38   :  { %s4819_s6 = smov 192   ;;  %s4820_s12 = smov 12  }
  0x39   :  { %54 = dma.hbm_to_vmem [thread:$0]  %s5021_s3, 12288, %s49_s10, [#allocation5], %s4819_s6, %s4819_s6, %s4820_s12  }
  0x3a   :  { %s4821_s15 = smov [#allocation9]  }
  0x3b   :  { %s70_s16 = sshll.u32 %s4821_s15, 4  ;;  %s71_s16 = int_to_ptr.vmem [resolvable:$true] %s70_s16 }
  0x3c   :  { %s4750_s1 = scalar_lea.vmem %s71_s16, 4096  ;;  %p4755_p12 = scmp.lt.s32.totalorder %s71_s16, %s71_s16 }
  0x3d   :  { %p4751_p11 = scmp.ne.s32.totalorder %s71_s16, %s4750_s1  ;;  %p4756_p13 = scmp.lt.s32.totalorder %s4750_s1, %s4750_s1 }
  0x3f   :  { %p4757_p0 = por %p4756_p13, %p4755_p12 }
  0x41   :  { %p4758_p1 = pnand %p4757_p0, %p4751_p11 }
  0x43   :  { %4761 = shalt.err (!%p4758_p1)
}
  0x44   :  { %s4822_s17 = smov 128   ;;  %s4823_s18 = smov 8  }
  0x45   :  { %76 = dma.hbm_to_vmem [thread:$0]  %s5023_s5, 4096, %s71_s16, [#allocation8], %s4822_s17, %s4822_s17, %s4823_s18  }
  0x46   :  { %s4824_s21 = smov [#allocation12]  }
  0x47   :  { %s92_s22 = sshll.u32 %s4824_s21, 4  ;;  %s93_s22 = int_to_ptr.vmem [resolvable:$true] %s92_s22 }
  0x48   :  { %s4770_s3 = scalar_lea.vmem %s93_s22, 2048  ;;  %p4775_p3 = scmp.lt.s32.totalorder %s93_s22, %s93_s22 }
  0x49   :  { %p4771_p2 = scmp.ne.s32.totalorder %s93_s22, %s4770_s3  ;;  %p4776_p4 = scmp.lt.s32.totalorder %s4770_s3, %s4770_s3 }
  0x4b   :  { %p4777_p5 = por %p4776_p4, %p4775_p3 }
  0x4d   :  { %p4778_p6 = pnand %p4777_p5, %p4771_p2 }
  0x4f   :  { %4781 = shalt.err (!%p4778_p6)
}
  0x50   :  { %s4825_s23 = smov 64   ;;  %s4826_s24 = smov 4  }
  0x51   :  { %98 = dma.hbm_to_vmem [thread:$0]  %s5025_s7, 2048, %s93_s22, [#allocation11], %s4825_s23, %s4825_s23, %s4826_s24  }
  0x52   :  { %s4827_s26 = smov [#allocation13]  }
  0x53   :  { %s105_s4 = sshll.u32 %s4827_s26, 4  ;;  %s106_s4 = int_to_ptr.vmem [resolvable:$true] %s105_s4 }
  0x54   :  { %s4790_s5 = scalar_lea.vmem %s106_s4, 16  ;;  %s4794_s27 = scalar_lea.vmem %s106_s4, 32 }
  0x55   :  { %p4791_p7 = scmp.ne.s32.totalorder %s106_s4, %s4790_s5  ;;  %p4795_p8 = scmp.lt.s32.totalorder %s106_s4, %s106_s4 }
  0x56   :  { %p4796_p9 = scmp.lt.s32.totalorder %s4794_s27, %s4790_s5 }
  0x58   :  { %p4797_p10 = por %p4796_p9, %p4795_p8 }
  0x5a   :  { %p4798_p11 = pnand %p4797_p10, %p4791_p7 }
  0x5c   :  { %4801 = shalt.err (!%p4798_p11)
}
  0x5d   :  { %108 = dma.hbm_to_vmem [thread:$0]  %s5026_s8, 16, %s106_s4, [#allocation14]  }
  0x5e   :  { %4802 = dma.done.wait [#allocation3], 40960  }
  0x5f   :  { %4803 = vsyncadd [#allocation3], 4294926336 }
  0x60   :  { %4804 = dma.done.wait [#allocation5], 12416  }
  0x61   :  { %4805 = vsyncadd [#allocation5], 4294954880 }
  0x62   :  { %4806 = dma.done.wait [#allocation8], 4144  }
  0x63   :  { %4807 = vsyncadd [#allocation8], 4294963152 }
  0x64   :  { %4808 = dma.done.wait [#allocation11], 2080  }
  0x65   :  { %4809 = vsyncadd [#allocation11], 4294965216 }
  0x66   :  { %4810 = dma.done.wait [#allocation14], 16  }
  0x67   :  { %4811 = vsyncadd [#allocation14], 4294967280  ;;  %v193_v0 = vld [vmem:[#allocation2 + $0x1c0] sm:$0xff]  ;;  %v4911_v54 = vld [vmem:[%s5018_s0 + $0x8] sm:$0xff] }
  0x68   :  { %v197_v1 = vld [vmem:[#allocation2 + $0x1e0] sm:$0xff]  ;;  %v4919_v59 = vcombine.high %v4911_v54, %v4911_v54 }
  0x69   :  { %v321_v2 = vld [vmem:[#allocation2 + $0x5c0] sm:$0xff]  ;;  %v3948_v3 = vcombine.high %v193_v0, %v197_v1  ;;  %v3947_v5 = vcombine.low %v193_v0, %v197_v1 }
  0x6a   :  { %v325_v4 = vld [vmem:[#allocation2 + $0x5e0] sm:$0xff]  ;;  %2190 = vmatprep.mubr.bf16.mxu1 %v4919_v59 }
  0x6b   :  { %v185_v6 = vld [vmem:[#allocation2 + $0x180] sm:$0xff]  ;;  %v4076_v8 = vcombine.high %v321_v2, %v325_v4  ;;  %v4075_v9 = vcombine.low %v321_v2, %v325_v4  ;;  %2117 = vmatprep.subr.bf16.mxu0 %v3948_v3 }
  0x6c   :  { %v189_v7 = vld [vmem:[#allocation2 + $0x1a0] sm:$0xff]  ;;  %2118 = vmatpush1.bf16.msra.mxu0 %v3947_v5 }
  0x6d   :  { %v3940_v10 = vcombine.high %v185_v6, %v189_v7  ;;  %v313_v11 = vld [vmem:[#allocation2 + $0x580] sm:$0xff]  ;;  %2158 = vmatprep.subr.bf16.mxu1 %v4076_v8  ;;  %v3939_v18 = vcombine.low %v185_v6, %v189_v7 }
  0x6e   :  { %v317_v12 = vld [vmem:[#allocation2 + $0x5a0] sm:$0xff]  ;;  %2159 = vmatpush1.bf16.msra.mxu1 %v4075_v9 }
  0x6f   :  { %v177_v13 = vld [vmem:[#allocation2 + $0x140] sm:$0xff]  ;;  %v4068_v14 = vcombine.high %v313_v11, %v317_v12  ;;  %2119 = vmatprep.subr.bf16.mxu0 %v3940_v10  ;;  %v4067_v19 = vcombine.low %v313_v11, %v317_v12 }
  0x70   :  { %v181_v15 = vld [vmem:[#allocation2 + $0x160] sm:$0xff]  ;;  %2120 = vmatpush1.bf16.msra.mxu0 %v3939_v18 }
  0x71   :  { %v305_v16 = vld [vmem:[#allocation2 + $0x540] sm:$0xff]  ;;  %v3932_v20 = vcombine.high %v177_v13, %v181_v15  ;;  %2160 = vmatprep.subr.bf16.mxu1 %v4068_v14  ;;  %v3931_v26 = vcombine.low %v177_v13, %v181_v15 }
  0x72   :  { %v309_v17 = vld [vmem:[#allocation2 + $0x560] sm:$0xff]  ;;  %2161 = vmatpush1.bf16.msra.mxu1 %v4067_v19 }
  0x73   :  { %v4060_v21 = vcombine.high %v305_v16, %v309_v17  ;;  %v169_v22 = vld [vmem:[#allocation2 + $0x100] sm:$0xff]  ;;  %2121 = vmatprep.subr.bf16.mxu0 %v3932_v20  ;;  %v4059_v27 = vcombine.low %v305_v16, %v309_v17 }
  0x74   :  { %v173_v23 = vld [vmem:[#allocation2 + $0x120] sm:$0xff]  ;;  %2122 = vmatpush1.bf16.msra.mxu0 %v3931_v26 }
  0x75   :  { %v297_v24 = vld [vmem:[#allocation2 + $0x500] sm:$0xff]  ;;  %v3924_v28 = vcombine.high %v169_v22, %v173_v23  ;;  %2162 = vmatprep.subr.bf16.mxu1 %v4060_v21  ;;  %v3923_v34 = vcombine.low %v169_v22, %v173_v23 }
  0x76   :  { %v301_v25 = vld [vmem:[#allocation2 + $0x520] sm:$0xff]  ;;  %2163 = vmatpush1.bf16.msra.mxu1 %v4059_v27 }
  0x77   :  { %v4052_v29 = vcombine.high %v297_v24, %v301_v25  ;;  %v161_v30 = vld [vmem:[#allocation2 + $0xc0] sm:$0xff]  ;;  %2123 = vmatprep.subr.bf16.mxu0 %v3924_v28  ;;  %v4051_v35 = vcombine.low %v297_v24, %v301_v25 }
  0x78   :  { %v165_v31 = vld [vmem:[#allocation2 + $0xe0] sm:$0xff]  ;;  %2124 = vmatpush1.bf16.msra.mxu0 %v3923_v34 }
  0x79   :  { %v289_v32 = vld [vmem:[#allocation2 + $0x4c0] sm:$0xff]  ;;  %v3916_v36 = vcombine.high %v161_v30, %v165_v31  ;;  %2164 = vmatprep.subr.bf16.mxu1 %v4052_v29  ;;  %v3915_v42 = vcombine.low %v161_v30, %v165_v31 }
  0x7a   :  { %v293_v33 = vld [vmem:[#allocation2 + $0x4e0] sm:$0xff]  ;;  %2165 = vmatpush1.bf16.msra.mxu1 %v4051_v35 }
  0x7b   :  { %v4044_v37 = vcombine.high %v289_v32, %v293_v33  ;;  %v153_v38 = vld [vmem:[#allocation2 + $0x80] sm:$0xff]  ;;  %2125 = vmatprep.subr.bf16.mxu0 %v3916_v36  ;;  %v4043_v43 = vcombine.low %v289_v32, %v293_v33 }
  0x7c   :  { %v157_v39 = vld [vmem:[#allocation2 + $0xa0] sm:$0xff]  ;;  %2126 = vmatpush1.bf16.msra.mxu0 %v3915_v42 }
  0x7d   :  { %v281_v40 = vld [vmem:[#allocation2 + $0x480] sm:$0xff]  ;;  %v3908_v44 = vcombine.high %v153_v38, %v157_v39  ;;  %2166 = vmatprep.subr.bf16.mxu1 %v4044_v37  ;;  %v3907_v50 = vcombine.low %v153_v38, %v157_v39 }
  0x7e   :  { %v285_v41 = vld [vmem:[#allocation2 + $0x4a0] sm:$0xff]  ;;  %2167 = vmatpush1.bf16.msra.mxu1 %v4043_v43 }
  0x7f   :  { %v4036_v45 = vcombine.high %v281_v40, %v285_v41  ;;  %v145_v46 = vld [vmem:[#allocation2 + $0x40] sm:$0xff]  ;;  %2127 = vmatprep.subr.bf16.mxu0 %v3908_v44  ;;  %v4035_v51 = vcombine.low %v281_v40, %v285_v41 }
  0x80   :  { %v149_v47 = vld [vmem:[#allocation2 + $0x60] sm:$0xff]  ;;  %2128 = vmatpush1.bf16.msra.mxu0 %v3907_v50 }
  0x81   :  { %v273_v48 = vld [vmem:[#allocation2 + $0x440] sm:$0xff]  ;;  %v3900_v52 = vcombine.high %v145_v46, %v149_v47  ;;  %2168 = vmatprep.subr.bf16.mxu1 %v4036_v45  ;;  %v3899_v62 = vcombine.low %v145_v46, %v149_v47 }
  0x82   :  { %v277_v49 = vld [vmem:[#allocation2 + $0x460] sm:$0xff]  ;;  %2169 = vmatpush1.bf16.msra.mxu1 %v4035_v51 }
  0x83   :  { %v4906_v53 = vld [vmem:[%s5018_s0] sm:$0xff]  ;;  %v4028_v55 = vcombine.high %v273_v48, %v277_v49  ;;  %2129 = vmatprep.subr.bf16.mxu0 %v3900_v52  ;;  %v4027_v63 = vcombine.low %v273_v48, %v277_v49 }
  0x84   :  { %v137_v56 = vld [vmem:[#allocation2] sm:$0xff]  ;;  %v4915_v58 = vcombine.high %v4906_v53, %v4906_v53  ;;  %2130 = vmatpush1.bf16.msra.mxu0 %v3899_v62 }
  0x85   :  { %v141_v57 = vld [vmem:[#allocation2 + $0x20] sm:$0xff]  ;;  %2170 = vmatprep.subr.bf16.mxu1 %v4028_v55 }
  0x86   :  { %v265_v60 = vld [vmem:[#allocation2 + $0x400] sm:$0xff]  ;;  %2149 = vmatprep.mubr.bf16.mxu0 %v4915_v58  ;;  %v3892_v0 = vcombine.high %v137_v56, %v141_v57  ;;  %v3891_v6 = vcombine.low %v137_v56, %v141_v57  ;;  %2171 = vmatpush1.bf16.msra.mxu1 %v4027_v63 }
  0x87   :  { %v269_v61 = vld [vmem:[#allocation2 + $0x420] sm:$0xff] }
  0x88   :  { %v4020_v1 = vcombine.high %v265_v60, %v269_v61  ;;  %v257_v2 = vld [vmem:[#allocation2 + $0x3c0] sm:$0xff]  ;;  %2131 = vmatprep.subr.bf16.mxu0 %v3892_v0  ;;  %v4019_v7 = vcombine.low %v265_v60, %v269_v61 }
  0x89   :  { %v261_v3 = vld [vmem:[#allocation2 + $0x3e0] sm:$0xff]  ;;  %2132 = vmatpush1.bf16.msra.mxu0 %v3891_v6 }
  0x8a   :  { %v385_v4 = vld [vmem:[#allocation2 + $0x7c0] sm:$0xff]  ;;  %v4012_v8 = vcombine.high %v257_v2, %v261_v3  ;;  %2172 = vmatprep.subr.bf16.mxu1 %v4020_v1  ;;  %v4011_v14 = vcombine.low %v257_v2, %v261_v3 }
  0x8b   :  { %v389_v5 = vld [vmem:[#allocation2 + $0x7e0] sm:$0xff]  ;;  %2173 = vmatpush1.bf16.msra.mxu1 %v4019_v7 }
  0x8c   :  { %v4140_v9 = vcombine.high %v385_v4, %v389_v5  ;;  %v249_v10 = vld [vmem:[#allocation2 + $0x380] sm:$0xff]  ;;  %2133 = vmatprep.subr.bf16.mxu0 %v4012_v8  ;;  %v4139_v15 = vcombine.low %v385_v4, %v389_v5  ;;  %v194_v8 = vld [vmem:[#allocation2 + $0x1c8] sm:$0xff] }
  0x8d   :  { %v253_v11 = vld [vmem:[#allocation2 + $0x3a0] sm:$0xff]  ;;  %2134 = vmatpush2.bf16.msra.mxu0 %v4011_v14 }
  0x8e   :  { %v377_v12 = vld [vmem:[#allocation2 + $0x780] sm:$0xff]  ;;  %v4004_v16 = vcombine.high %v249_v10, %v253_v11  ;;  %2174 = vmatprep.subr.bf16.mxu1 %v4140_v9  ;;  %v4003_v22 = vcombine.low %v249_v10, %v253_v11  ;;  %v198_v9 = vld [vmem:[#allocation2 + $0x1e8] sm:$0xff] }
  0x8f   :  { %v381_v13 = vld [vmem:[#allocation2 + $0x7a0] sm:$0xff]  ;;  %2175 = vmatpush2.bf16.msra.mxu1 %v4139_v15 }
  0x90   :  { %v4132_v17 = vcombine.high %v377_v12, %v381_v13  ;;  %v241_v18 = vld [vmem:[#allocation2 + $0x340] sm:$0xff]  ;;  %2135 = vmatprep.subr.bf16.mxu0 %v4004_v16  ;;  %v4131_v23 = vcombine.low %v377_v12, %v381_v13  ;;  %v3950_v13 = vcombine.high %v194_v8, %v198_v9  ;;  %v4925_v16 = vcombine.low %v4906_v53, %v4906_v53 }
  0x91   :  { %v245_v19 = vld [vmem:[#allocation2 + $0x360] sm:$0xff]  ;;  %2136 = vmatpush2.bf16.msra.mxu0 %v4003_v22 }
  0x92   :  { %v369_v20 = vld [vmem:[#allocation2 + $0x740] sm:$0xff]  ;;  %v3996_v24 = vcombine.high %v241_v18, %v245_v19  ;;  %2176 = vmatprep.subr.bf16.mxu1 %v4132_v17  ;;  %v3995_v30 = vcombine.low %v241_v18, %v245_v19  ;;  %v186_v17 = vld [vmem:[#allocation2 + $0x188] sm:$0xff]  ;;  %v4929_v19 = vcombine.low %v4911_v54, %v4911_v54 }
  0x93   :  { %v373_v21 = vld [vmem:[#allocation2 + $0x760] sm:$0xff]  ;;  %2177 = vmatpush2.bf16.msra.mxu1 %v4131_v23  ;;  %v190_v18 = vld [vmem:[#allocation2 + $0x1a8] sm:$0xff] }
  0x94   :  { %v4124_v25 = vcombine.high %v369_v20, %v373_v21  ;;  %v233_v26 = vld [vmem:[#allocation2 + $0x300] sm:$0xff]  ;;  %2137 = vmatprep.subr.bf16.mxu0 %v3996_v24  ;;  %v4123_v31 = vcombine.low %v369_v20, %v373_v21  ;;  %v3949_v21 = vcombine.low %v194_v8, %v198_v9  ;;  %v3941_v54 = vcombine.low %v186_v17, %v190_v18 }
  0x95   :  { %v237_v27 = vld [vmem:[#allocation2 + $0x320] sm:$0xff]  ;;  %2138 = vmatpush2.bf16.msra.mxu0 %v3995_v30 }
  0x96   :  { %v361_v28 = vld [vmem:[#allocation2 + $0x700] sm:$0xff]  ;;  %v3988_v32 = vcombine.high %v233_v26, %v237_v27  ;;  %2178 = vmatprep.subr.bf16.mxu1 %v4124_v25  ;;  %v3987_v38 = vcombine.low %v233_v26, %v237_v27  ;;  %v3942_v25 = vcombine.high %v186_v17, %v190_v18  ;;  %v178_v26 = vld [vmem:[#allocation2 + $0x148] sm:$0xff]  ;;  %v4938_v18 = vld [vmem:[%s5018_s0 + $0x10] ss:$0 sps:$4 sm:$0xff]  }
  0x97   :  { %v365_v29 = vld [vmem:[#allocation2 + $0x720] sm:$0xff]  ;;  %2179 = vmatpush2.bf16.msra.mxu1 %v4123_v31  ;;  %v182_v27 = vld [vmem:[#allocation2 + $0x168] sm:$0xff] }
  0x98   :  { %v4116_v33 = vcombine.high %v361_v28, %v365_v29  ;;  %v225_v34 = vld [vmem:[#allocation2 + $0x2c0] sm:$0xff]  ;;  %2139 = vmatprep.subr.bf16.mxu0 %v3988_v32  ;;  %v4115_v39 = vcombine.low %v361_v28, %v365_v29  ;;  %v170_v31 = vld [vmem:[#allocation2 + $0x108] sm:$0xff]  ;;  %v3934_v32 = vcombine.high %v178_v26, %v182_v27 }
  0x99   :  { %v229_v35 = vld [vmem:[#allocation2 + $0x2e0] sm:$0xff]  ;;  %2140 = vmatpush2.bf16.msra.mxu0 %v3987_v38 }
  0x9a   :  { %v353_v36 = vld [vmem:[#allocation2 + $0x6c0] sm:$0xff]  ;;  %v3980_v40 = vcombine.high %v225_v34, %v229_v35  ;;  %2180 = vmatprep.subr.bf16.mxu1 %v4116_v33  ;;  %v3979_v46 = vcombine.low %v225_v34, %v229_v35  ;;  %v174_v33 = vld [vmem:[#allocation2 + $0x128] sm:$0xff]  ;;  %v4828_v34 = vmov 0  }
  0x9b   :  { %v357_v37 = vld [vmem:[#allocation2 + $0x6e0] sm:$0xff]  ;;  %2181 = vmatpush2.bf16.msra.mxu1 %v4115_v39 }
  0x9c   :  { %v4108_v41 = vcombine.high %v353_v36, %v357_v37  ;;  %v217_v42 = vld [vmem:[#allocation2 + $0x280] sm:$0xff]  ;;  %2141 = vmatprep.subr.bf16.mxu0 %v3980_v40  ;;  %v4107_v47 = vcombine.low %v353_v36, %v357_v37  ;;  %v3933_v36 = vcombine.low %v178_v26, %v182_v27  ;;  %v162_v40 = vld [vmem:[#allocation2 + $0xc8] sm:$0xff] }
  0x9d   :  { %v221_v43 = vld [vmem:[#allocation2 + $0x2a0] sm:$0xff]  ;;  %2142 = vmatpush2.bf16.msra.mxu0 %v3979_v46 }
  0x9e   :  { %v345_v44 = vld [vmem:[#allocation2 + $0x680] sm:$0xff]  ;;  %v3972_v48 = vcombine.high %v217_v42, %v221_v43  ;;  %2182 = vmatprep.subr.bf16.mxu1 %v4108_v41  ;;  %v3971_v56 = vcombine.low %v217_v42, %v221_v43  ;;  %v3926_v41 = vcombine.high %v170_v31, %v174_v33  ;;  %v166_v42 = vld [vmem:[#allocation2 + $0xe8] sm:$0xff] }
  0x9f   :  { %v349_v45 = vld [vmem:[#allocation2 + $0x6a0] sm:$0xff]  ;;  %2183 = vmatpush2.bf16.msra.mxu1 %v4107_v47 }
  0xa0   :  { %v4100_v49 = vcombine.high %v345_v44, %v349_v45  ;;  %v209_v50 = vld [vmem:[#allocation2 + $0x240] sm:$0xff]  ;;  %2143 = vmatprep.subr.bf16.mxu0 %v3972_v48  ;;  %v4099_v57 = vcombine.low %v345_v44, %v349_v45  ;;  %v3925_v44 = vcombine.low %v170_v31, %v174_v33  ;;  %v154_v48 = vld [vmem:[#allocation2 + $0x88] sm:$0xff] }
  0xa1   :  { %v213_v51 = vld [vmem:[#allocation2 + $0x260] sm:$0xff]  ;;  %2144 = vmatpush2.bf16.msra.mxu0 %v3971_v56  ;;  %v310_v31 = vld [vmem:[#allocation2 + $0x568] sm:$0xff] }
  0xa2   :  { %v337_v52 = vld [vmem:[#allocation2 + $0x640] sm:$0xff]  ;;  %v3964_v60 = vcombine.high %v209_v50, %v213_v51  ;;  %2184 = vmatprep.subr.bf16.mxu1 %v4100_v49  ;;  %v3963_v2 = vcombine.low %v209_v50, %v213_v51  ;;  %v3918_v49 = vcombine.high %v162_v40, %v166_v42  ;;  %v158_v50 = vld [vmem:[#allocation2 + $0xa8] sm:$0xff] }
  0xa3   :  { %v341_v55 = vld [vmem:[#allocation2 + $0x660] sm:$0xff]  ;;  %2185 = vmatpush2.bf16.msra.mxu1 %v4099_v57 }
  0xa4   :  { %v4092_v61 = vcombine.high %v337_v52, %v341_v55  ;;  %v201_v62 = vld [vmem:[#allocation2 + $0x200] sm:$0xff]  ;;  %2145 = vmatprep.subr.bf16.mxu0 %v3964_v60  ;;  %v4091_v3 = vcombine.low %v337_v52, %v341_v55  ;;  %v3917_v52 = vcombine.low %v162_v40, %v166_v42  ;;  %v146_v60 = vld [vmem:[#allocation2 + $0x48] sm:$0xff] }
  0xa5   :  { %v205_v63 = vld [vmem:[#allocation2 + $0x220] sm:$0xff]  ;;  %2146 = vmatpush2.bf16.msra.mxu0 %v3963_v2  ;;  %v302_v40 = vld [vmem:[#allocation2 + $0x528] sm:$0xff] }
  0xa6   :  { %v329_v0 = vld [vmem:[#allocation2 + $0x600] sm:$0xff]  ;;  %v3956_v4 = vcombine.high %v201_v62, %v205_v63  ;;  %2186 = vmatprep.subr.bf16.mxu1 %v4092_v61  ;;  %v3955_v10 = vcombine.low %v201_v62, %v205_v63  ;;  %v3910_v61 = vcombine.high %v154_v48, %v158_v50  ;;  %v150_v62 = vld [vmem:[#allocation2 + $0x68] sm:$0xff] }
  0xa7   :  { %v333_v1 = vld [vmem:[#allocation2 + $0x620] sm:$0xff]  ;;  %2187 = vmatpush2.bf16.msra.mxu1 %v4091_v3  ;;  %v3901_v8 = vcombine.low %v146_v60, %v150_v62 }
  0xa8   :  { %v4084_v5 = vcombine.high %v329_v0, %v333_v1  ;;  %v449_v6 = vld [vmem:[#allocation2 + $0x9c0] sm:$0xff]  ;;  %2147 = vmatprep.subr.bf16.mxu0 %v3956_v4  ;;  %v4083_v11 = vcombine.low %v329_v0, %v333_v1  ;;  %v3909_v0 = vcombine.low %v154_v48, %v158_v50  ;;  %v138_v4 = vld [vmem:[#allocation2 + $0x8] sm:$0xff] }
  0xa9   :  { %v453_v7 = vld [vmem:[#allocation2 + $0x9e0] sm:$0xff]  ;;  %2148 = vmatpush2.bf16.msra.mxu0 %v3955_v10  ;;  %v258_v10 = vld [vmem:[#allocation2 + $0x3c8] sm:$0xff] }
  0xaa   :  { %v4204_v12 = vcombine.high %v449_v6, %v453_v7  ;;  %2188 = vmatprep.subr.bf16.mxu1 %v4084_v5  ;;  %v441_v14 = vld [vmem:[#allocation2 + $0x980] sm:$0xff]  ;;  %v4203_v20 = vcombine.low %v449_v6, %v453_v7  ;;  %v3902_v5 = vcombine.high %v146_v60, %v150_v62  ;;  %v142_v6 = vld [vmem:[#allocation2 + $0x28] sm:$0xff] }
  0xab   :  { %v445_v15 = vld [vmem:[#allocation2 + $0x9a0] sm:$0xff]  ;;  %2189 = vmatpush2.bf16.msra.mxu1 %v4083_v11  ;;  %v262_v11 = vld [vmem:[#allocation2 + $0x3e8] sm:$0xff]  ;;  %v3893_v17 = vcombine.low %v138_v4, %v142_v6 }
  0xac   :  { %2199 = vmatprep.subr.bf16.mxu0 %v4204_v12  ;;  %v4196_v22 = vcombine.high %v441_v14, %v445_v15  ;;  %v433_v23 = vld [vmem:[#allocation2 + $0x940] sm:$0xff]  ;;  %2240 = vmatprep.subr.bf16.mxu1 %v3950_v13  ;;  %v4195_v53 = vcombine.low %v441_v14, %v445_v15  ;;  %v322_v12 = vld [vmem:[#allocation2 + $0x5c8] sm:$0xff]  ;;  %v3894_v13 = vcombine.high %v138_v4, %v142_v6 }
  0xad   :  { %v437_v24 = vld [vmem:[#allocation2 + $0x960] sm:$0xff]  ;;  %2150 = vmatmul.mubr.bf16.vlgmr.msra.gmra.mxu0 %v4925_v16  ;;  %v326_v14 = vld [vmem:[#allocation2 + $0x5e8] sm:$0xff]  ;;  %v4013_v27 = vcombine.low %v258_v10, %v262_v11 }
  0xae   :  { %2191 = vmatmul.mubr.bf16.vlgmr.msra.gmra.mxu1 %v4929_v19  ;;  %2200 = vmatpush1.bf16.msra.mxu0 %v4203_v20  ;;  %v4188_v28 = vcombine.high %v433_v23, %v437_v24  ;;  %v425_v29 = vld [vmem:[#allocation2 + $0x900] sm:$0xff]  ;;  %v4187_v35 = vcombine.low %v433_v23, %v437_v24  ;;  %v4078_v20 = vcombine.high %v322_v12, %v326_v14  ;;  %v314_v23 = vld [vmem:[#allocation2 + $0x588] sm:$0xff] }
  0xaf   :  { %2241 = vmatpush1.bf16.msra.mxu1 %v3949_v21  ;;  %2201 = vmatprep.subr.bf16.mxu0 %v4196_v22  ;;  %v429_v30 = vld [vmem:[#allocation2 + $0x920] sm:$0xff]  ;;  %v250_v21 = vld [vmem:[#allocation2 + $0x388] sm:$0xff]  ;;  %v4014_v24 = vcombine.high %v258_v10, %v262_v11  ;;  %v4077_v26 = vcombine.low %v322_v12, %v326_v14 }
  0xb0   :  { %2242 = vmatprep.subr.bf16.mxu1 %v3942_v25  ;;  %2231 = vmatprep.mubr.bf16.mxu0 %v4828_v34  ;;  %v4180_v37 = vcombine.high %v425_v29, %v429_v30  ;;  %v417_v38 = vld [vmem:[#allocation2 + $0x8c0] sm:$0xff]  ;;  %v4179_v43 = vcombine.low %v425_v29, %v429_v30  ;;  %v254_v22 = vld [vmem:[#allocation2 + $0x3a8] sm:$0xff] }
  0xb1   :  { %2272 = vmatprep.mubr.bf16.mxu1 %v4915_v58  ;;  %v421_v39 = vld [vmem:[#allocation2 + $0x8e0] sm:$0xff]  ;;  %v318_v25 = vld [vmem:[#allocation2 + $0x5a8] sm:$0xff]  ;;  %v4006_v30 = vcombine.high %v250_v21, %v254_v22  ;;  %v4005_v33 = vcombine.low %v250_v21, %v254_v22 }
  0xb2   :  { %2202 = vmatpush1.bf16.msra.mxu0 %v4195_v53  ;;  %v4172_v45 = vcombine.high %v417_v38, %v421_v39  ;;  %v409_v46 = vld [vmem:[#allocation2 + $0x880] sm:$0xff]  ;;  %v4171_v51 = vcombine.low %v417_v38, %v421_v39  ;;  %v4070_v53 = vcombine.high %v314_v23, %v318_v25  ;;  %v306_v29 = vld [vmem:[#allocation2 + $0x548] sm:$0xff] }
  0xb3   :  { %2243 = vmatpush1.bf16.msra.mxu1 %v3941_v54  ;;  %2203 = vmatprep.subr.bf16.mxu0 %v4188_v28  ;;  %v413_v47 = vld [vmem:[#allocation2 + $0x8a0] sm:$0xff]  ;;  %v242_v54 = vld [vmem:[#allocation2 + $0x348] sm:$0xff] }
  0xb4   :  { %2244 = vmatprep.subr.bf16.mxu1 %v3934_v32  ;;  %v4164_v55 = vcombine.high %v409_v46, %v413_v47  ;;  %v401_v56 = vld [vmem:[#allocation2 + $0x840] sm:$0xff]  ;;  %v4163_v63 = vcombine.low %v409_v46, %v413_v47  ;;  %v246_v28 = vld [vmem:[#allocation2 + $0x368] sm:$0xff]  ;;  %v4069_v32 = vcombine.low %v314_v23, %v318_v25 }
  0xb5   :  { %v405_v57 = vld [vmem:[#allocation2 + $0x860] sm:$0xff]  ;;  %v298_v38 = vld [vmem:[#allocation2 + $0x508] sm:$0xff]  ;;  %v3998_v39 = vcombine.high %v242_v54, %v246_v28  ;;  %v3997_v42 = vcombine.low %v242_v54, %v246_v28 }
  0xb6   :  { %2204 = vmatpush1.bf16.msra.mxu0 %v4187_v35  ;;  %v4156_v1 = vcombine.high %v401_v56, %v405_v57  ;;  %v393_v2 = vld [vmem:[#allocation2 + $0x800] sm:$0xff]  ;;  %v4155_v7 = vcombine.low %v401_v56, %v405_v57  ;;  %v4062_v35 = vcombine.high %v306_v29, %v310_v31  ;;  %v290_v46 = vld [vmem:[#allocation2 + $0x4c8] sm:$0xff] }
  0xb7   :  { %2245 = vmatpush1.bf16.msra.mxu1 %v3933_v36  ;;  %2205 = vmatprep.subr.bf16.mxu0 %v4180_v37  ;;  %v397_v3 = vld [vmem:[#allocation2 + $0x820] sm:$0xff]  ;;  %v234_v36 = vld [vmem:[#allocation2 + $0x308] sm:$0xff] }
  0xb8   :  { %2246 = vmatprep.subr.bf16.mxu1 %v3926_v41  ;;  %v4148_v9 = vcombine.high %v393_v2, %v397_v3  ;;  %v4147_v15 = vcombine.low %v393_v2, %v397_v3  ;;  %v238_v37 = vld [vmem:[#allocation2 + $0x328] sm:$0xff]  ;;  %v4061_v41 = vcombine.low %v306_v29, %v310_v31 }
  0xb9   :  { %v3990_v47 = vcombine.high %v234_v36, %v238_v37  ;;  %v294_v48 = vld [vmem:[#allocation2 + $0x4e8] sm:$0xff]  ;;  %v3989_v50 = vcombine.low %v234_v36, %v238_v37 }
  0xba   :  { %2206 = vmatpush1.bf16.msra.mxu0 %v4179_v43  ;;  %v4054_v43 = vcombine.high %v298_v38, %v302_v40  ;;  %v282_v56 = vld [vmem:[#allocation2 + $0x488] sm:$0xff] }
  0xbb   :  { %2247 = vmatpush1.bf16.msra.mxu1 %v3925_v44  ;;  %2207 = vmatprep.subr.bf16.mxu0 %v4172_v45  ;;  %v226_v44 = vld [vmem:[#allocation2 + $0x2c8] sm:$0xff] }
  0xbc   :  { %2248 = vmatprep.subr.bf16.mxu1 %v3918_v49  ;;  %v230_v45 = vld [vmem:[#allocation2 + $0x2e8] sm:$0xff]  ;;  %v4053_v49 = vcombine.low %v298_v38, %v302_v40 }
  0xbd   :  { %v3982_v57 = vcombine.high %v226_v44, %v230_v45  ;;  %v286_v60 = vld [vmem:[#allocation2 + $0x4a8] sm:$0xff]  ;;  %v3981_v62 = vcombine.low %v226_v44, %v230_v45 }
  0xbe   :  { %2208 = vmatpush1.bf16.msra.mxu0 %v4171_v51  ;;  %v4046_v51 = vcombine.high %v290_v46, %v294_v48  ;;  %v274_v2 = vld [vmem:[#allocation2 + $0x448] sm:$0xff] }
  0xbf   :  { %2249 = vmatpush1.bf16.msra.mxu1 %v3917_v52  ;;  %2209 = vmatprep.subr.bf16.mxu0 %v4164_v55  ;;  %v218_v52 = vld [vmem:[#allocation2 + $0x288] sm:$0xff] }
  0xc0   :  { %2250 = vmatprep.subr.bf16.mxu1 %v3910_v61  ;;  %v222_v55 = vld [vmem:[#allocation2 + $0x2a8] sm:$0xff]  ;;  %v4045_v61 = vcombine.low %v290_v46, %v294_v48 }
  0xc1   :  { %v3974_v3 = vcombine.high %v218_v52, %v222_v55  ;;  %v278_v4 = vld [vmem:[#allocation2 + $0x468] sm:$0xff]  ;;  %v3973_v6 = vcombine.low %v218_v52, %v222_v55 }
  0xc2   :  { %2210 = vmatpush1.bf16.msra.mxu0 %v4163_v63  ;;  %v4038_v63 = vcombine.high %v282_v56, %v286_v60  ;;  %v266_v10 = vld [vmem:[#allocation2 + $0x408] sm:$0xff] }
  0xc3   :  { %2251 = vmatpush1.bf16.msra.mxu1 %v3909_v0  ;;  %2211 = vmatprep.subr.bf16.mxu0 %v4156_v1  ;;  %v210_v0 = vld [vmem:[#allocation2 + $0x248] sm:$0xff] }
  0xc4   :  { %2252 = vmatprep.subr.bf16.mxu1 %v3902_v5  ;;  %v214_v1 = vld [vmem:[#allocation2 + $0x268] sm:$0xff]  ;;  %v4037_v5 = vcombine.low %v282_v56, %v286_v60 }
  0xc5   :  { %v3966_v11 = vcombine.high %v210_v0, %v214_v1  ;;  %v270_v12 = vld [vmem:[#allocation2 + $0x428] sm:$0xff]  ;;  %v3965_v14 = vcombine.low %v210_v0, %v214_v1 }
  0xc6   :  { %2212 = vmatpush1.bf16.msra.mxu0 %v4155_v7  ;;  %v4030_v7 = vcombine.high %v274_v2, %v278_v4  ;;  %v450_v21 = vld [vmem:[#allocation2 + $0x9c8] sm:$0xff] }
  0xc7   :  { %2253 = vmatpush1.bf16.msra.mxu1 %v3901_v8  ;;  %2213 = vmatprep.subr.bf16.mxu0 %v4148_v9  ;;  %v202_v8 = vld [vmem:[#allocation2 + $0x208] sm:$0xff] }
  0xc8   :  { %2254 = vmatprep.subr.bf16.mxu1 %v3894_v13  ;;  %v206_v9 = vld [vmem:[#allocation2 + $0x228] sm:$0xff]  ;;  %v4029_v13 = vcombine.low %v274_v2, %v278_v4 }
  0xc9   :  { %v3958_v22 = vcombine.high %v202_v8, %v206_v9  ;;  %v454_v23 = vld [vmem:[#allocation2 + $0x9e8] sm:$0xff]  ;;  %v3957_v25 = vcombine.low %v202_v8, %v206_v9 }
  0xca   :  { %2214 = vmatpush1.bf16.msra.mxu0 %v4147_v15  ;;  %v4022_v15 = vcombine.high %v266_v10, %v270_v12  ;;  %v442_v54 = vld [vmem:[#allocation2 + $0x988] sm:$0xff]  ;;  %v4206_v28 = vcombine.high %v450_v21, %v454_v23  ;;  %v4205_v31 = vcombine.low %v450_v21, %v454_v23 }
  0xcb   :  { %2255 = vmatpush1.bf16.msra.mxu1 %v3893_v17  ;;  %2281 = vmatprep.subr.bf16.mxu0 %v4078_v20  ;;  %v386_v17 = vld [vmem:[#allocation2 + $0x7c8] sm:$0xff] }
  0xcc   :  { %2256 = vmatprep.subr.bf16.mxu1 %v4014_v24  ;;  %v390_v20 = vld [vmem:[#allocation2 + $0x7e8] sm:$0xff]  ;;  %v4021_v24 = vcombine.low %v266_v10, %v270_v12 }
  0xcd   :  { %2232 = vmatmul.mubr.bf16.vlgmr.msra.gmra.mxu0 %v4938_v18  ;;  %v446_v29 = vld [vmem:[#allocation2 + $0x9a8] sm:$0xff] }
  0xce   :  { %2282 = vmatpush1.bf16.msra.mxu0 %v4077_v26  ;;  %2313 = vmatprep.mubr.bf16.mxu0 %v4919_v59  ;;  %v4142_v26 = vcombine.high %v386_v17, %v390_v20  ;;  %v4198_v36 = vcombine.high %v442_v54, %v446_v29  ;;  %v434_v37 = vld [vmem:[#allocation2 + $0x948] sm:$0xff]  ;;  %v4197_v40 = vcombine.low %v442_v54, %v446_v29  ;;  %v327_v54 = vld [vmem:[#allocation2 + $0x5f0] sm:$0xff] }
  0xcf   :  { %2257 = vmatpush2.bf16.msra.mxu1 %v4013_v27  ;;  %2283 = vmatprep.subr.bf16.mxu0 %v4070_v53  ;;  %v378_v27 = vld [vmem:[#allocation2 + $0x788] sm:$0xff] }
  0xd0   :  { %2258 = vmatprep.subr.bf16.mxu1 %v4006_v30  ;;  %v382_v53 = vld [vmem:[#allocation2 + $0x7a8] sm:$0xff]  ;;  %v4141_v30 = vcombine.low %v386_v17, %v390_v20 }
  0xd1   :  { %v438_v38 = vld [vmem:[#allocation2 + $0x968] sm:$0xff] }
  0xd2   :  { %2284 = vmatpush1.bf16.msra.mxu0 %v4069_v32  ;;  %v4134_v32 = vcombine.high %v378_v27, %v382_v53  ;;  %v426_v44 = vld [vmem:[#allocation2 + $0x908] sm:$0xff]  ;;  %v4190_v45 = vcombine.high %v434_v37, %v438_v38  ;;  %v4189_v48 = vcombine.low %v434_v37, %v438_v38 }
  0xd3   :  { %2259 = vmatpush2.bf16.msra.mxu1 %v4005_v33  ;;  %2285 = vmatprep.subr.bf16.mxu0 %v4062_v35  ;;  %v370_v33 = vld [vmem:[#allocation2 + $0x748] sm:$0xff] }
  0xd4   :  { %2260 = vmatprep.subr.bf16.mxu1 %v3998_v39  ;;  %v374_v35 = vld [vmem:[#allocation2 + $0x768] sm:$0xff]  ;;  %v4133_v39 = vcombine.low %v378_v27, %v382_v53  ;;  %v323_v27 = vld [vmem:[#allocation2 + $0x5d0] sm:$0xff] }
  0xd5   :  { %v430_v46 = vld [vmem:[#allocation2 + $0x928] sm:$0xff]  ;;  %v4079_v38 = vcombine.low %v323_v27, %v327_v54 }
  0xd6   :  { %2286 = vmatpush1.bf16.msra.mxu0 %v4061_v41  ;;  %v4126_v41 = vcombine.high %v370_v33, %v374_v35  ;;  %v418_v52 = vld [vmem:[#allocation2 + $0x8c8] sm:$0xff]  ;;  %v4182_v55 = vcombine.high %v426_v44, %v430_v46  ;;  %v4181_v60 = vcombine.low %v426_v44, %v430_v46  ;;  %v311_v44 = vld [vmem:[#allocation2 + $0x570] sm:$0xff] }
  0xd7   :  { %2261 = vmatpush2.bf16.msra.mxu1 %v3997_v42  ;;  %2287 = vmatprep.subr.bf16.mxu0 %v4054_v43  ;;  %v362_v42 = vld [vmem:[#allocation2 + $0x708] sm:$0xff] }
  0xd8   :  { %2262 = vmatprep.subr.bf16.mxu1 %v3990_v47  ;;  %v366_v43 = vld [vmem:[#allocation2 + $0x728] sm:$0xff]  ;;  %v4125_v47 = vcombine.low %v370_v33, %v374_v35  ;;  %v315_v33 = vld [vmem:[#allocation2 + $0x590] sm:$0xff]  ;;  %v4080_v35 = vcombine.high %v323_v27, %v327_v54 }
  0xd9   :  { %v422_v56 = vld [vmem:[#allocation2 + $0x8e8] sm:$0xff] }
  0xda   :  { %2288 = vmatpush1.bf16.msra.mxu0 %v4053_v49  ;;  %v4118_v49 = vcombine.high %v362_v42, %v366_v43  ;;  %v410_v0 = vld [vmem:[#allocation2 + $0x888] sm:$0xff]  ;;  %v4174_v1 = vcombine.high %v418_v52, %v422_v56  ;;  %v4173_v4 = vcombine.low %v418_v52, %v422_v56  ;;  %v303_v52 = vld [vmem:[#allocation2 + $0x530] sm:$0xff] }
  0xdb   :  { %2263 = vmatpush2.bf16.msra.mxu1 %v3989_v50  ;;  %2289 = vmatprep.subr.bf16.mxu0 %v4046_v51  ;;  %v354_v50 = vld [vmem:[#allocation2 + $0x6c8] sm:$0xff] }
  0xdc   :  { %2264 = vmatprep.subr.bf16.mxu1 %v3982_v57  ;;  %v358_v51 = vld [vmem:[#allocation2 + $0x6e8] sm:$0xff]  ;;  %v4117_v57 = vcombine.low %v362_v42, %v366_v43  ;;  %v183_v42 = vld [vmem:[#allocation2 + $0x170] sm:$0xff] }
  0xdd   :  { %v414_v2 = vld [vmem:[#allocation2 + $0x8a8] sm:$0xff]  ;;  %v307_v43 = vld [vmem:[#allocation2 + $0x550] sm:$0xff] }
  0xde   :  { %2290 = vmatpush1.bf16.msra.mxu0 %v4045_v61  ;;  %v4110_v61 = vcombine.high %v354_v50, %v358_v51  ;;  %v402_v8 = vld [vmem:[#allocation2 + $0x848] sm:$0xff]  ;;  %v4166_v9 = vcombine.high %v410_v0, %v414_v2  ;;  %v4165_v12 = vcombine.low %v410_v0, %v414_v2 }
  0xdf   :  { %2265 = vmatpush2.bf16.msra.mxu1 %v3981_v62  ;;  %2291 = vmatprep.subr.bf16.mxu0 %v4038_v63  ;;  %v346_v62 = vld [vmem:[#allocation2 + $0x688] sm:$0xff] }
  0xe0   :  { %2266 = vmatprep.subr.bf16.mxu1 %v3974_v3  ;;  %v350_v63 = vld [vmem:[#allocation2 + $0x6a8] sm:$0xff]  ;;  %v4109_v3 = vcombine.low %v354_v50, %v358_v51  ;;  %v175_v50 = vld [vmem:[#allocation2 + $0x130] sm:$0xff] }
  0xe1   :  { %v406_v10 = vld [vmem:[#allocation2 + $0x868] sm:$0xff]  ;;  %v299_v51 = vld [vmem:[#allocation2 + $0x510] sm:$0xff] }
  0xe2   :  { %2292 = vmatpush1.bf16.msra.mxu0 %v4037_v5  ;;  %v4102_v5 = vcombine.high %v346_v62, %v350_v63  ;;  %v394_v17 = vld [vmem:[#allocation2 + $0x808] sm:$0xff]  ;;  %v4158_v20 = vcombine.high %v402_v8, %v406_v10  ;;  %v4157_v23 = vcombine.low %v402_v8, %v406_v10 }
  0xe3   :  { %2267 = vmatpush2.bf16.msra.mxu1 %v3973_v6  ;;  %2293 = vmatprep.subr.bf16.mxu0 %v4030_v7  ;;  %v338_v6 = vld [vmem:[#allocation2 + $0x648] sm:$0xff] }
  0xe4   :  { %2268 = vmatprep.subr.bf16.mxu1 %v3966_v11  ;;  %v342_v7 = vld [vmem:[#allocation2 + $0x668] sm:$0xff]  ;;  %v4101_v11 = vcombine.low %v346_v62, %v350_v63  ;;  %v291_v62 = vld [vmem:[#allocation2 + $0x4d0] sm:$0xff] }
  0xe5   :  { %v398_v21 = vld [vmem:[#allocation2 + $0x828] sm:$0xff]  ;;  %v295_v63 = vld [vmem:[#allocation2 + $0x4f0] sm:$0xff] }
  0xe6   :  { %2294 = vmatpush1.bf16.msra.mxu0 %v4029_v13  ;;  %v4094_v13 = vcombine.high %v338_v6, %v342_v7  ;;  %v4150_v53 = vcombine.high %v394_v17, %v398_v21  ;;  %v4149_v29 = vcombine.low %v394_v17, %v398_v21 }
  0xe7   :  { %2269 = vmatpush2.bf16.msra.mxu1 %v3965_v14  ;;  %2295 = vmatprep.subr.bf16.mxu0 %v4022_v15  ;;  %v330_v14 = vld [vmem:[#allocation2 + $0x608] sm:$0xff] }
  0xe8   :  { %2270 = vmatprep.subr.bf16.mxu1 %v3958_v22  ;;  %v334_v15 = vld [vmem:[#allocation2 + $0x628] sm:$0xff]  ;;  %v4093_v22 = vcombine.low %v338_v6, %v342_v7  ;;  %v283_v6 = vld [vmem:[#allocation2 + $0x490] sm:$0xff] }
  0xe9   :  { %v287_v7 = vld [vmem:[#allocation2 + $0x4b0] sm:$0xff] }
  0xea   :  { %2296 = vmatpush1.bf16.msra.mxu0 %v4021_v24  ;;  %v4086_v24 = vcombine.high %v330_v14, %v334_v15 }
  0xeb   :  { %2271 = vmatpush2.bf16.msra.mxu1 %v3957_v25  ;;  %2297 = vmatprep.subr.bf16.mxu0 %v4142_v26  ;;  %v195_v25 = vld [vmem:[#allocation2 + $0x1d0] sm:$0xff] }
  0xec   :  { %2322 = vmatprep.subr.bf16.mxu1 %v4206_v28  ;;  %v199_v26 = vld [vmem:[#allocation2 + $0x1f0] sm:$0xff]  ;;  %v4085_v28 = vcombine.low %v330_v14, %v334_v15 }
  0xed   :  { %v3951_v37 = vcombine.low %v195_v25, %v199_v26  ;;  %v275_v14 = vld [vmem:[#allocation2 + $0x450] sm:$0xff] }
  0xee   :  { %2273 = vmatmul.mubr.bf16.vlgmr.msra.gmra.mxu1 %v4925_v16  ;;  %2298 = vmatpush2.bf16.msra.mxu0 %v4141_v30  ;;  %v3952_v30 = vcombine.high %v195_v25, %v199_v26  ;;  %v279_v15 = vld [vmem:[#allocation2 + $0x470] sm:$0xff] }
  0xef   :  { %2323 = vmatpush1.bf16.msra.mxu1 %v4205_v31  ;;  %2299 = vmatprep.subr.bf16.mxu0 %v4134_v32  ;;  %v187_v31 = vld [vmem:[#allocation2 + $0x190] sm:$0xff] }
  0xf0   :  { %2324 = vmatprep.subr.bf16.mxu1 %v4198_v36  ;;  %2354 = vmatprep.mubr.bf16.mxu1 %v4828_v34  ;;  %v191_v32 = vld [vmem:[#allocation2 + $0x1b0] sm:$0xff] }
  0xf1   :  { %v319_v36 = vld [vmem:[#allocation2 + $0x5b0] sm:$0xff] }
  0xf2   :  { %2300 = vmatpush2.bf16.msra.mxu0 %v4133_v39  ;;  %v3944_v39 = vcombine.high %v187_v31, %v191_v32  ;;  %v4071_v46 = vcombine.low %v315_v33, %v319_v36  ;;  %v267_v25 = vld [vmem:[#allocation2 + $0x410] sm:$0xff] }
  0xf3   :  { %2325 = vmatpush1.bf16.msra.mxu1 %v4197_v40  ;;  %2301 = vmatprep.subr.bf16.mxu0 %v4126_v41  ;;  %v179_v40 = vld [vmem:[#allocation2 + $0x150] sm:$0xff]  ;;  %v4072_v41 = vcombine.high %v315_v33, %v319_v36 }
  0xf4   :  { %2326 = vmatprep.subr.bf16.mxu1 %v4190_v45  ;;  %v3943_v45 = vcombine.low %v187_v31, %v191_v32  ;;  %v271_v26 = vld [vmem:[#allocation2 + $0x430] sm:$0xff] }
  0xf5   :  { %v387_v31 = vld [vmem:[#allocation2 + $0x7d0] sm:$0xff] }
  0xf6   :  { %2302 = vmatpush2.bf16.msra.mxu0 %v4125_v47  ;;  %v3936_v47 = vcombine.high %v179_v40, %v183_v42  ;;  %v391_v32 = vld [vmem:[#allocation2 + $0x7f0] sm:$0xff] }
  0xf7   :  { %2327 = vmatpush1.bf16.msra.mxu1 %v4189_v48  ;;  %2303 = vmatprep.subr.bf16.mxu0 %v4118_v49  ;;  %v4064_v48 = vcombine.high %v307_v43, %v311_v44  ;;  %v171_v49 = vld [vmem:[#allocation2 + $0x110] sm:$0xff] }
  0xf8   :  { %2328 = vmatprep.subr.bf16.mxu1 %v4182_v55  ;;  %v3935_v55 = vcombine.low %v179_v40, %v183_v42  ;;  %v3928_v56 = vcombine.high %v171_v49, %v175_v50  ;;  %v3927_v0 = vcombine.low %v171_v49, %v175_v50  ;;  %v379_v40 = vld [vmem:[#allocation2 + $0x790] sm:$0xff] }
  0xf9   :  { %v375_v49 = vld [vmem:[#allocation2 + $0x770] sm:$0xff] }
  0xfa   :  { %2304 = vmatpush2.bf16.msra.mxu0 %v4117_v57  ;;  %v4056_v57 = vcombine.high %v299_v51, %v303_v52 }
  0xfb   :  { %2329 = vmatpush1.bf16.msra.mxu1 %v4181_v60  ;;  %2305 = vmatprep.subr.bf16.mxu0 %v4110_v61  ;;  %v163_v60 = vld [vmem:[#allocation2 + $0xd0] sm:$0xff] }
  0xfc   :  { %2330 = vmatprep.subr.bf16.mxu1 %v4174_v1  ;;  %v167_v61 = vld [vmem:[#allocation2 + $0xf0] sm:$0xff]  ;;  %v4055_v1 = vcombine.low %v299_v51, %v303_v52 }
  0xfd   :  { %v3920_v2 = vcombine.high %v163_v60, %v167_v61  ;;  %v3919_v8 = vcombine.low %v163_v60, %v167_v61  ;;  %v367_v60 = vld [vmem:[#allocation2 + $0x730] sm:$0xff] }
  0xfe   :  { %2306 = vmatpush2.bf16.msra.mxu0 %v4109_v3  ;;  %v4048_v3 = vcombine.high %v291_v62, %v295_v63 }
  0xff   :  { %2331 = vmatpush1.bf16.msra.mxu1 %v4173_v4  ;;  %2307 = vmatprep.subr.bf16.mxu0 %v4102_v5  ;;  %v155_v4 = vld [vmem:[#allocation2 + $0x90] sm:$0xff] }
 0x100   :  { %2332 = vmatprep.subr.bf16.mxu1 %v4166_v9  ;;  %v159_v5 = vld [vmem:[#allocation2 + $0xb0] sm:$0xff]  ;;  %v4047_v9 = vcombine.low %v291_v62, %v295_v63 }
 0x101   :  { %v3912_v10 = vcombine.high %v155_v4, %v159_v5  ;;  %v3911_v17 = vcombine.low %v155_v4, %v159_v5  ;;  %v359_v4 = vld [vmem:[#allocation2 + $0x6f0] sm:$0xff] }
 0x102   :  { %2308 = vmatpush2.bf16.msra.mxu0 %v4101_v11  ;;  %v4040_v11 = vcombine.high %v283_v6, %v287_v7 }
 0x103   :  { %2333 = vmatpush1.bf16.msra.mxu1 %v4165_v12  ;;  %2309 = vmatprep.subr.bf16.mxu0 %v4094_v13  ;;  %v147_v12 = vld [vmem:[#allocation2 + $0x50] sm:$0xff] }
 0x104   :  { %2334 = vmatprep.subr.bf16.mxu1 %v4158_v20  ;;  %v151_v13 = vld [vmem:[#allocation2 + $0x70] sm:$0xff]  ;;  %v4039_v20 = vcombine.low %v283_v6, %v287_v7 }
 0x105   :  { %v3904_v21 = vcombine.high %v147_v12, %v151_v13  ;;  %v3903_v27 = vcombine.low %v147_v12, %v151_v13  ;;  %v351_v12 = vld [vmem:[#allocation2 + $0x6b0] sm:$0xff] }
 0x106   :  { %2310 = vmatpush2.bf16.msra.mxu0 %v4093_v22  ;;  %v4032_v22 = vcombine.high %v275_v14, %v279_v15 }
 0x107   :  { %2335 = vmatpush1.bf16.msra.mxu1 %v4157_v23  ;;  %2311 = vmatprep.subr.bf16.mxu0 %v4086_v24  ;;  %v139_v23 = vld [vmem:[#allocation2 + $0x10] sm:$0xff] }
 0x108   :  { %2336 = vmatprep.subr.bf16.mxu1 %v4150_v53  ;;  %v143_v24 = vld [vmem:[#allocation2 + $0x30] sm:$0xff]  ;;  %v4031_v53 = vcombine.low %v275_v14, %v279_v15 }
 0x109   :  { %v3896_v54 = vcombine.high %v139_v23, %v143_v24  ;;  %v3895_v33 = vcombine.low %v139_v23, %v143_v24  ;;  %v343_v23 = vld [vmem:[#allocation2 + $0x670] sm:$0xff] }
 0x10a   :  { %2312 = vmatpush2.bf16.msra.mxu0 %v4085_v28  ;;  %v4024_v28 = vcombine.high %v267_v25, %v271_v26 }
 0x10b   :  { %2337 = vmatpush1.bf16.msra.mxu1 %v4149_v29  ;;  %2363 = vmatprep.subr.bf16.mxu0 %v3952_v30  ;;  %v259_v29 = vld [vmem:[#allocation2 + $0x3d0] sm:$0xff] }
 0x10c   :  { %2404 = vmatprep.subr.bf16.mxu1 %v4080_v35  ;;  %v263_v30 = vld [vmem:[#allocation2 + $0x3f0] sm:$0xff]  ;;  %v4023_v35 = vcombine.low %v267_v25, %v271_v26 }
 0x10d   :  { %2314 = vmatmul.mubr.bf16.vlgmr.msra.gmra.mxu0 %v4929_v19  ;;  %v4016_v36 = vcombine.high %v259_v29, %v263_v30  ;;  %v4015_v42 = vcombine.low %v259_v29, %v263_v30  ;;  %v335_v29 = vld [vmem:[#allocation2 + $0x630] sm:$0xff] }
 0x10e   :  { %2355 = vmatmul.mubr.bf16.vlgmr.msra.gmra.mxu1 %v4938_v18  ;;  %2364 = vmatpush1.bf16.msra.mxu0 %v3951_v37  ;;  %v4063_v18 = vcombine.low %v307_v43, %v311_v44  ;;  %v4144_v37 = vcombine.high %v387_v31, %v391_v32  ;;  %v4143_v43 = vcombine.low %v387_v31, %v391_v32 }
 0x10f   :  { %2405 = vmatpush1.bf16.msra.mxu1 %v4079_v38  ;;  %2365 = vmatprep.subr.bf16.mxu0 %v3944_v39  ;;  %v251_v38 = vld [vmem:[#allocation2 + $0x390] sm:$0xff] }
 0x110   :  { %2406 = vmatprep.subr.bf16.mxu1 %v4072_v41  ;;  %2395 = vmatprep.mubr.bf16.mxu0 %v4915_v58  ;;  %v255_v39 = vld [vmem:[#allocation2 + $0x3b0] sm:$0xff] }
 0x111   :  { %2436 = vmatprep.mubr.bf16.mxu1 %v4919_v59  ;;  %v383_v41 = vld [vmem:[#allocation2 + $0x7b0] sm:$0xff]  ;;  %v4008_v44 = vcombine.high %v251_v38, %v255_v39  ;;  %v4007_v50 = vcombine.low %v251_v38, %v255_v39  ;;  %v200_v38 = vld [vmem:[#allocation2 + $0x1f8] sm:$0xff] }
 0x112   :  { %2366 = vmatpush1.bf16.msra.mxu0 %v3943_v45  ;;  %v4136_v45 = vcombine.high %v379_v40, %v383_v41  ;;  %v4135_v51 = vcombine.low %v379_v40, %v383_v41 }
 0x113   :  { %2407 = vmatpush1.bf16.msra.mxu1 %v4071_v46  ;;  %2367 = vmatprep.subr.bf16.mxu0 %v3936_v47  ;;  %v243_v46 = vld [vmem:[#allocation2 + $0x350] sm:$0xff] }
 0x114   :  { %2408 = vmatprep.subr.bf16.mxu1 %v4064_v48  ;;  %v247_v47 = vld [vmem:[#allocation2 + $0x370] sm:$0xff] }
 0x115   :  { %v371_v48 = vld [vmem:[#allocation2 + $0x750] sm:$0xff]  ;;  %v4000_v52 = vcombine.high %v243_v46, %v247_v47  ;;  %v3999_v61 = vcombine.low %v243_v46, %v247_v47  ;;  %v192_v46 = vld [vmem:[#allocation2 + $0x1b8] sm:$0xff] }
 0x116   :  { %2368 = vmatpush1.bf16.msra.mxu0 %v3935_v55  ;;  %v4128_v55 = vcombine.high %v371_v48, %v375_v49  ;;  %v4127_v62 = vcombine.low %v371_v48, %v375_v49 }
 0x117   :  { %2409 = vmatpush1.bf16.msra.mxu1 %v4063_v18  ;;  %2369 = vmatprep.subr.bf16.mxu0 %v3928_v56  ;;  %v235_v18 = vld [vmem:[#allocation2 + $0x310] sm:$0xff] }
 0x118   :  { %2410 = vmatprep.subr.bf16.mxu1 %v4056_v57  ;;  %v239_v56 = vld [vmem:[#allocation2 + $0x330] sm:$0xff] }
 0x119   :  { %v363_v57 = vld [vmem:[#allocation2 + $0x710] sm:$0xff]  ;;  %v3992_v63 = vcombine.high %v235_v18, %v239_v56  ;;  %v3991_v5 = vcombine.low %v235_v18, %v239_v56  ;;  %v184_v18 = vld [vmem:[#allocation2 + $0x178] sm:$0xff] }
 0x11a   :  { %2370 = vmatpush1.bf16.msra.mxu0 %v3927_v0  ;;  %v4120_v0 = vcombine.high %v363_v57, %v367_v60  ;;  %v4119_v6 = vcombine.low %v363_v57, %v367_v60 }
 0x11b   :  { %2411 = vmatpush1.bf16.msra.mxu1 %v4055_v1  ;;  %2371 = vmatprep.subr.bf16.mxu0 %v3920_v2  ;;  %v227_v1 = vld [vmem:[#allocation2 + $0x2d0] sm:$0xff] }
 0x11c   :  { %2412 = vmatprep.subr.bf16.mxu1 %v4048_v3  ;;  %v231_v2 = vld [vmem:[#allocation2 + $0x2f0] sm:$0xff] }
 0x11d   :  { %v355_v3 = vld [vmem:[#allocation2 + $0x6d0] sm:$0xff]  ;;  %v3984_v7 = vcombine.high %v227_v1, %v231_v2  ;;  %v3983_v13 = vcombine.low %v227_v1, %v231_v2  ;;  %v176_v1 = vld [vmem:[#allocation2 + $0x138] sm:$0xff] }
 0x11e   :  { %2372 = vmatpush1.bf16.msra.mxu0 %v3919_v8  ;;  %v4112_v8 = vcombine.high %v355_v3, %v359_v4  ;;  %v4111_v14 = vcombine.low %v355_v3, %v359_v4 }
 0x11f   :  { %2413 = vmatpush1.bf16.msra.mxu1 %v4047_v9  ;;  %2373 = vmatprep.subr.bf16.mxu0 %v3912_v10  ;;  %v219_v9 = vld [vmem:[#allocation2 + $0x290] sm:$0xff] }
 0x120   :  { %2414 = vmatprep.subr.bf16.mxu1 %v4040_v11  ;;  %v223_v10 = vld [vmem:[#allocation2 + $0x2b0] sm:$0xff] }
 0x121   :  { %v347_v11 = vld [vmem:[#allocation2 + $0x690] sm:$0xff]  ;;  %v3976_v15 = vcombine.high %v219_v9, %v223_v10  ;;  %v3975_v24 = vcombine.low %v219_v9, %v223_v10  ;;  %v168_v9 = vld [vmem:[#allocation2 + $0xf8] sm:$0xff] }
 0x122   :  { %2374 = vmatpush1.bf16.msra.mxu0 %v3911_v17  ;;  %v4104_v17 = vcombine.high %v347_v11, %v351_v12  ;;  %v4103_v25 = vcombine.low %v347_v11, %v351_v12 }
 0x123   :  { %2415 = vmatpush1.bf16.msra.mxu1 %v4039_v20  ;;  %2375 = vmatprep.subr.bf16.mxu0 %v3904_v21  ;;  %v211_v20 = vld [vmem:[#allocation2 + $0x250] sm:$0xff] }
 0x124   :  { %2416 = vmatprep.subr.bf16.mxu1 %v4032_v22  ;;  %v215_v21 = vld [vmem:[#allocation2 + $0x270] sm:$0xff] }
 0x125   :  { %v339_v22 = vld [vmem:[#allocation2 + $0x650] sm:$0xff]  ;;  %v3968_v26 = vcombine.high %v211_v20, %v215_v21  ;;  %v3967_v30 = vcombine.low %v211_v20, %v215_v21 }
 0x126   :  { %2376 = vmatpush1.bf16.msra.mxu0 %v3903_v27  ;;  %v4096_v27 = vcombine.high %v339_v22, %v343_v23  ;;  %v4095_v31 = vcombine.low %v339_v22, %v343_v23 }
 0x127   :  { %2417 = vmatpush1.bf16.msra.mxu1 %v4031_v53  ;;  %2377 = vmatprep.subr.bf16.mxu0 %v3896_v54  ;;  %v203_v53 = vld [vmem:[#allocation2 + $0x210] sm:$0xff] }
 0x128   :  { %2418 = vmatprep.subr.bf16.mxu1 %v4024_v28  ;;  %v207_v54 = vld [vmem:[#allocation2 + $0x230] sm:$0xff] }
 0x129   :  { %v331_v28 = vld [vmem:[#allocation2 + $0x610] sm:$0xff]  ;;  %v3960_v32 = vcombine.high %v203_v53, %v207_v54  ;;  %v3959_v39 = vcombine.low %v203_v53, %v207_v54  ;;  %v459_v54 = vlaneseq }
 0x12a   :  { %2378 = vmatpush1.bf16.msra.mxu0 %v3895_v33  ;;  %v4088_v33 = vcombine.high %v331_v28, %v335_v29  ;;  %v4087_v40 = vcombine.low %v331_v28, %v335_v29 }
 0x12b   :  { %2419 = vmatpush1.bf16.msra.mxu1 %v4023_v35  ;;  %2379 = vmatprep.subr.bf16.mxu0 %v4016_v36  ;;  %v451_v35 = vld [vmem:[#allocation2 + $0x9d0] sm:$0xff] }
 0x12c   :  { %2420 = vmatprep.subr.bf16.mxu1 %v4144_v37  ;;  %v455_v36 = vld [vmem:[#allocation2 + $0x9f0] sm:$0xff]  ;;  %v196_v37 = vld [vmem:[#allocation2 + $0x1d8] sm:$0xff] }
 0x12d   :  { %v4208_v41 = vcombine.high %v451_v35, %v455_v36  ;;  %v4207_v47 = vcombine.low %v451_v35, %v455_v36  ;;  %v3953_v48 = vcombine.low %v196_v37, %v200_v38  ;;  %v144_v35 = vld [vmem:[#allocation2 + $0x38] sm:$0xff] }
 0x12e   :  { %2380 = vmatpush2.bf16.msra.mxu0 %v4015_v42  ;;  %v3954_v42 = vcombine.high %v196_v37, %v200_v38  ;;  %v4952_v37 = vshrl.u32 %v459_v54, 7 }
 0x12f   :  { %2421 = vmatpush2.bf16.msra.mxu1 %v4143_v43  ;;  %2381 = vmatprep.subr.bf16.mxu0 %v4008_v44  ;;  %v443_v43 = vld [vmem:[#allocation2 + $0x990] sm:$0xff] }
 0x130   :  { %2422 = vmatprep.subr.bf16.mxu1 %v4136_v45  ;;  %v447_v44 = vld [vmem:[#allocation2 + $0x9b0] sm:$0xff]  ;;  %v188_v45 = vld [vmem:[#allocation2 + $0x198] sm:$0xff] }
 0x131   :  { %v4200_v49 = vcombine.high %v443_v43, %v447_v44  ;;  %v4199_v56 = vcombine.low %v443_v43, %v447_v44  ;;  %v3945_v57 = vcombine.low %v188_v45, %v192_v46  ;;  %v260_v43 = vld [vmem:[#allocation2 + $0x3d8] sm:$0xff] }
 0x132   :  { %2382 = vmatpush2.bf16.msra.mxu0 %v4007_v50  ;;  %v3946_v50 = vcombine.high %v188_v45, %v192_v46  ;;  %v264_v44 = vld [vmem:[#allocation2 + $0x3f8] sm:$0xff]  ;;  %v4955_v46 = vsub.s32 0, %v4952_v37 }
 0x133   :  { %2423 = vmatpush2.bf16.msra.mxu1 %v4135_v51  ;;  %2383 = vmatprep.subr.bf16.mxu0 %v4000_v52  ;;  %v435_v51 = vld [vmem:[#allocation2 + $0x950] sm:$0xff] }
 0x134   :  { %2424 = vmatprep.subr.bf16.mxu1 %v4128_v55  ;;  %v439_v52 = vld [vmem:[#allocation2 + $0x970] sm:$0xff]  ;;  %v180_v55 = vld [vmem:[#allocation2 + $0x158] sm:$0xff] }
 0x135   :  { %v4192_v60 = vcombine.high %v435_v51, %v439_v52  ;;  %v4191_v2 = vcombine.low %v435_v51, %v439_v52  ;;  %v3937_v3 = vcombine.low %v180_v55, %v184_v18  ;;  %v4960_v51 = vsub.s32 1, %v4952_v37  ;;  %v316_v52 = vld [vmem:[#allocation2 + $0x598] sm:$0xff] }
 0x136   :  { %2384 = vmatpush2.bf16.msra.mxu0 %v3999_v61  ;;  %v3938_v61 = vcombine.high %v180_v55, %v184_v18  ;;  %v320_v55 = vld [vmem:[#allocation2 + $0x5b8] sm:$0xff] }
 0x137   :  { %2425 = vmatpush2.bf16.msra.mxu1 %v4127_v62  ;;  %2385 = vmatprep.subr.bf16.mxu0 %v3992_v63  ;;  %v427_v62 = vld [vmem:[#allocation2 + $0x910] sm:$0xff]  ;;  %v252_v18 = vld [vmem:[#allocation2 + $0x398] sm:$0xff] }
 0x138   :  { %2426 = vmatprep.subr.bf16.mxu1 %v4120_v0  ;;  %v431_v63 = vld [vmem:[#allocation2 + $0x930] sm:$0xff]  ;;  %v172_v0 = vld [vmem:[#allocation2 + $0x118] sm:$0xff] }
 0x139   :  { %v4184_v4 = vcombine.high %v427_v62, %v431_v63  ;;  %v4183_v10 = vcombine.low %v427_v62, %v431_v63  ;;  %v3929_v11 = vcombine.low %v172_v0, %v176_v1  ;;  %v4074_v62 = vcombine.high %v316_v52, %v320_v55 }
 0x13a   :  { %2386 = vmatpush2.bf16.msra.mxu0 %v3991_v5  ;;  %v3930_v5 = vcombine.high %v172_v0, %v176_v1  ;;  %v308_v1 = vld [vmem:[#allocation2 + $0x558] sm:$0xff] }
 0x13b   :  { %2427 = vmatpush2.bf16.msra.mxu1 %v4119_v6  ;;  %2387 = vmatprep.subr.bf16.mxu0 %v3984_v7  ;;  %v419_v6 = vld [vmem:[#allocation2 + $0x8d0] sm:$0xff] }
 0x13c   :  { %2428 = vmatprep.subr.bf16.mxu1 %v4112_v8  ;;  %v423_v7 = vld [vmem:[#allocation2 + $0x8f0] sm:$0xff]  ;;  %v164_v8 = vld [vmem:[#allocation2 + $0xd8] sm:$0xff] }
 0x13d   :  { %v4176_v12 = vcombine.high %v419_v6, %v423_v7  ;;  %v4175_v20 = vcombine.low %v419_v6, %v423_v7  ;;  %v3921_v21 = vcombine.low %v164_v8, %v168_v9  ;;  %v248_v6 = vld [vmem:[#allocation2 + $0x378] sm:$0xff] }
 0x13e   :  { %2388 = vmatpush2.bf16.msra.mxu0 %v3983_v13  ;;  %v411_v13 = vld [vmem:[#allocation2 + $0x890] sm:$0xff] }
 0x13f   :  { %2429 = vmatpush2.bf16.msra.mxu1 %v4111_v14  ;;  %2389 = vmatprep.subr.bf16.mxu0 %v3976_v15  ;;  %v415_v14 = vld [vmem:[#allocation2 + $0x8b0] sm:$0xff]  ;;  %v156_v15 = vld [vmem:[#allocation2 + $0x98] sm:$0xff] }
 0x140   :  { %2430 = vmatprep.subr.bf16.mxu1 %v4104_v17  ;;  %v160_v17 = vld [vmem:[#allocation2 + $0xb8] sm:$0xff]  ;;  %v4168_v22 = vcombine.high %v411_v13, %v415_v14  ;;  %v4167_v53 = vcombine.low %v411_v13, %v415_v14 }
 0x141   :  { %v3914_v23 = vcombine.high %v156_v15, %v160_v17  ;;  %v3913_v28 = vcombine.low %v156_v15, %v160_v17  ;;  %v300_v17 = vld [vmem:[#allocation2 + $0x518] sm:$0xff] }
 0x142   :  { %2390 = vmatpush2.bf16.msra.mxu0 %v3975_v24  ;;  %v403_v24 = vld [vmem:[#allocation2 + $0x850] sm:$0xff] }
 0x143   :  { %2431 = vmatpush2.bf16.msra.mxu1 %v4103_v25  ;;  %2391 = vmatprep.subr.bf16.mxu0 %v3968_v26  ;;  %v407_v25 = vld [vmem:[#allocation2 + $0x870] sm:$0xff]  ;;  %v148_v26 = vld [vmem:[#allocation2 + $0x58] sm:$0xff] }
 0x144   :  { %2432 = vmatprep.subr.bf16.mxu1 %v4096_v27  ;;  %v152_v27 = vld [vmem:[#allocation2 + $0x78] sm:$0xff]  ;;  %v4160_v29 = vcombine.high %v403_v24, %v407_v25  ;;  %v4159_v36 = vcombine.low %v403_v24, %v407_v25 }
 0x145   :  { %v3905_v38 = vcombine.low %v148_v26, %v152_v27 }
 0x146   :  { %2392 = vmatpush2.bf16.msra.mxu0 %v3967_v30  ;;  %v3906_v30 = vcombine.high %v148_v26, %v152_v27 }
 0x147   :  { %2433 = vmatpush2.bf16.msra.mxu1 %v4095_v31  ;;  %2393 = vmatprep.subr.bf16.mxu0 %v3960_v32  ;;  %v395_v31 = vld [vmem:[#allocation2 + $0x810] sm:$0xff] }
 0x148   :  { %2434 = vmatprep.subr.bf16.mxu1 %v4088_v33  ;;  %v399_v32 = vld [vmem:[#allocation2 + $0x830] sm:$0xff]  ;;  %v140_v33 = vld [vmem:[#allocation2 + $0x18] sm:$0xff] }
 0x149   :  { %v4151_v45 = vcombine.low %v395_v31, %v399_v32 }
 0x14a   :  { %2394 = vmatpush2.bf16.msra.mxu0 %v3959_v39  ;;  %v4152_v39 = vcombine.high %v395_v31, %v399_v32  ;;  %v228_v31 = vld [vmem:[#allocation2 + $0x2d8] sm:$0xff] }
 0x14b   :  { %2435 = vmatpush2.bf16.msra.mxu1 %v4087_v40  ;;  %2445 = vmatprep.subr.bf16.mxu0 %v4208_v41  ;;  %v3898_v40 = vcombine.high %v140_v33, %v144_v35  ;;  %v324_v41 = vld [vmem:[#allocation2 + $0x5d8] sm:$0xff] }
 0x14c   :  { %2486 = vmatprep.subr.bf16.mxu1 %v3954_v42  ;;  %v328_v42 = vld [vmem:[#allocation2 + $0x5f8] sm:$0xff] }
 0x14d   :  { %2396 = vmatmul.mubr.bf16.vlgmr.msra.gmra.mxu0 %v4925_v16  ;;  %v232_v32 = vld [vmem:[#allocation2 + $0x2f8] sm:$0xff] }
 0x14e   :  { %2437 = vmatmul.mubr.bf16.vlgmr.msra.gmra.mxu1 %v4929_v19  ;;  %2446 = vmatpush1.bf16.msra.mxu0 %v4207_v47  ;;  %v3897_v47 = vcombine.low %v140_v33, %v144_v35 }
 0x14f   :  { %2487 = vmatpush1.bf16.msra.mxu1 %v3953_v48  ;;  %2447 = vmatprep.subr.bf16.mxu0 %v4200_v49  ;;  %v4957_v48 = vld [vmem:[#allocation4] sm:$0xff]  ;;  %v4082_v49 = vcombine.high %v324_v41, %v328_v42 }
 0x150   :  { %2488 = vmatprep.subr.bf16.mxu1 %v3946_v50  ;;  %2477 = vmatprep.mubr.bf16.mxu0 %v4828_v34  ;;  %v4018_v50 = vcombine.high %v260_v43, %v264_v44  ;;  %v466_v63 = vrot.slane %v4957_v48, %v4960_v51 }
 0x151   :  { %2518 = vmatprep.mubr.bf16.mxu1 %v4915_v58  ;;  %v3922_v58 = vcombine.high %v164_v8, %v168_v9  ;;  %v4073_v9 = vcombine.low %v316_v52, %v320_v55  ;;  %v212_v52 = vld [vmem:[#allocation2 + $0x258] sm:$0xff] }
 0x152   :  { %2448 = vmatpush1.bf16.msra.mxu0 %v4199_v56  ;;  %v256_v56 = vld [vmem:[#allocation2 + $0x3b8] sm:$0xff] }
 0x153   :  { %2489 = vmatpush1.bf16.msra.mxu1 %v3945_v57  ;;  %2449 = vmatprep.subr.bf16.mxu0 %v4192_v60  ;;  %v462_v57 = vrot.slane %v4957_v48, %v4955_v46  ;;  %v4081_v60 = vcombine.low %v324_v41, %v328_v42  ;;  %v4010_v0 = vcombine.high %v252_v18, %v256_v56  ;;  %v220_v41 = vld [vmem:[#allocation2 + $0x298] sm:$0xff] }
 0x154   :  { %2490 = vmatprep.subr.bf16.mxu1 %v3938_v61  ;;  %v4017_v61 = vcombine.low %v260_v43, %v264_v44  ;;  %v224_v42 = vld [vmem:[#allocation2 + $0x2b8] sm:$0xff]  ;;  %v3985_v44 = vcombine.low %v228_v31, %v232_v32 }
 0x155   :  { %v216_v55 = vld [vmem:[#allocation2 + $0x278] sm:$0xff] }
 0x156   :  { %2450 = vmatpush1.bf16.msra.mxu0 %v4191_v2  ;;  %v312_v2 = vld [vmem:[#allocation2 + $0x578] sm:$0xff] }
 0x157   :  { %2491 = vmatpush1.bf16.msra.mxu1 %v3937_v3  ;;  %2451 = vmatprep.subr.bf16.mxu0 %v4184_v4  ;;  %v4969_v4 = vld [vmem:[%s5018_s0 + $0x10] ss:$0 sps:$4 sm:$0xff]  }
 0x158   :  { %2492 = vmatprep.subr.bf16.mxu1 %v3930_v5  ;;  %v244_v5 = vld [vmem:[#allocation2 + $0x358] sm:$0xff] }
 0x159   :  { %v4002_v15 = vcombine.high %v244_v5, %v248_v6  ;;  %v4001_v27 = vcombine.low %v244_v5, %v248_v6  ;;  %v388_v6 = vld [vmem:[#allocation2 + $0x7d8] sm:$0xff] }
 0x15a   :  { %2452 = vmatpush1.bf16.msra.mxu0 %v4183_v10 }
 0x15b   :  { %2493 = vmatpush1.bf16.msra.mxu1 %v3929_v11  ;;  %2453 = vmatprep.subr.bf16.mxu0 %v4176_v12  ;;  %v4009_v11 = vcombine.low %v252_v18, %v256_v56  ;;  %v4066_v12 = vcombine.high %v308_v1, %v312_v2  ;;  %v3977_v56 = vcombine.low %v220_v41, %v224_v42 }
 0x15c   :  { %2494 = vmatprep.subr.bf16.mxu1 %v3922_v58 }
 0x15e   :  { %2454 = vmatpush1.bf16.msra.mxu0 %v4175_v20  ;;  %v304_v20 = vld [vmem:[#allocation2 + $0x538] sm:$0xff] }
 0x15f   :  { %2495 = vmatpush1.bf16.msra.mxu1 %v3921_v21  ;;  %2455 = vmatprep.subr.bf16.mxu0 %v4168_v22  ;;  %v236_v22 = vld [vmem:[#allocation2 + $0x318] sm:$0xff]  ;;  %v4057_v33 = vcombine.low %v300_v17, %v304_v20 }
 0x160   :  { %2496 = vmatprep.subr.bf16.mxu1 %v3914_v23  ;;  %v240_v23 = vld [vmem:[#allocation2 + $0x338] sm:$0xff] }
 0x161   :  { %v3993_v35 = vcombine.low %v236_v22, %v240_v23 }
 0x162   :  { %2456 = vmatpush1.bf16.msra.mxu0 %v4167_v53  ;;  %v4058_v53 = vcombine.high %v300_v17, %v304_v20  ;;  %v444_v17 = vld [vmem:[#allocation2 + $0x998] sm:$0xff] }
 0x163   :  { %2497 = vmatpush1.bf16.msra.mxu1 %v3913_v28  ;;  %2457 = vmatprep.subr.bf16.mxu0 %v4160_v29  ;;  %v3994_v28 = vcombine.high %v236_v22, %v240_v23  ;;  %v292_v29 = vld [vmem:[#allocation2 + $0x4d8] sm:$0xff] }
 0x164   :  { %2498 = vmatprep.subr.bf16.mxu1 %v3906_v30  ;;  %v296_v30 = vld [vmem:[#allocation2 + $0x4f8] sm:$0xff] }
 0x165   :  { %v4049_v43 = vcombine.low %v292_v29, %v296_v30  ;;  %v448_v20 = vld [vmem:[#allocation2 + $0x9b8] sm:$0xff] }
 0x166   :  { %2458 = vmatpush1.bf16.msra.mxu0 %v4159_v36  ;;  %v4050_v36 = vcombine.high %v292_v29, %v296_v30 }
 0x167   :  { %2499 = vmatpush1.bf16.msra.mxu1 %v3905_v38  ;;  %2459 = vmatprep.subr.bf16.mxu0 %v4152_v39  ;;  %v3986_v38 = vcombine.high %v228_v31, %v232_v32  ;;  %v284_v39 = vld [vmem:[#allocation2 + $0x498] sm:$0xff]  ;;  %v4201_v31 = vcombine.low %v444_v17, %v448_v20 }
 0x168   :  { %2500 = vmatprep.subr.bf16.mxu1 %v3898_v40  ;;  %v288_v40 = vld [vmem:[#allocation2 + $0x4b8] sm:$0xff] }
 0x169   :  { %v4041_v18 = vcombine.low %v284_v39, %v288_v40 }
 0x16a   :  { %2460 = vmatpush1.bf16.msra.mxu0 %v4151_v45  ;;  %v4042_v45 = vcombine.high %v284_v39, %v288_v40  ;;  %v428_v39 = vld [vmem:[#allocation2 + $0x918] sm:$0xff] }
 0x16b   :  { %2501 = vmatpush1.bf16.msra.mxu1 %v3897_v47  ;;  %2527 = vmatprep.subr.bf16.mxu0 %v4082_v49  ;;  %v3978_v47 = vcombine.high %v220_v41, %v224_v42  ;;  %v276_v49 = vld [vmem:[#allocation2 + $0x458] sm:$0xff] }
 0x16c   :  { %2502 = vmatprep.subr.bf16.mxu1 %v4018_v50  ;;  %v280_v50 = vld [vmem:[#allocation2 + $0x478] sm:$0xff] }
 0x16d   :  { %v2151_v3 = vpop.f32.mrf.mxu0  ;;  %2478 = vmatmul.mubr.bf16.vlgmr.msra.gmra.mxu0 %v4969_v4  ;;  %v432_v40 = vld [vmem:[#allocation2 + $0x938] sm:$0xff] }
 0x16e   :  { %v2152_v7 = vadd.f32 %v2151_v3, %v462_v57  ;;  %v2192_v8 = vpop.f32.mrf.mxu1  ;;  %2528 = vmatpush1.bf16.msra.mxu0 %v4081_v60  ;;  %2559 = vmatprep.mubr.bf16.mxu0 %v4919_v59  ;;  %v4065_v59 = vcombine.low %v308_v1, %v312_v2  ;;  %v4034_v57 = vcombine.high %v276_v49, %v280_v50 }
 0x16f   :  { %2503 = vmatpush2.bf16.msra.mxu1 %v4017_v61  ;;  %v2153_v10 = vpop.f32.mrf.mxu0  ;;  %2529 = vmatprep.subr.bf16.mxu0 %v4074_v62  ;;  %v3970_v60 = vcombine.high %v212_v52, %v216_v55  ;;  %v268_v61 = vld [vmem:[#allocation2 + $0x418] sm:$0xff]  ;;  %v4033_v1 = vcombine.low %v276_v49, %v280_v50  ;;  %v3969_v2 = vcombine.low %v212_v52, %v216_v55 }
 0x170   :  { %v4973_v58 = vadd.f32 %v2192_v8, %v2152_v7  ;;  %v2154_v13 = vadd.f32 %v2153_v10, %v466_v63  ;;  %v2194_v14 = vpop.f32.mrf.mxu1  ;;  %2504 = vmatprep.subr.bf16.mxu1 %v4010_v0  ;;  %v272_v62 = vld [vmem:[#allocation2 + $0x438] sm:$0xff] }
 0x171   :  { %v2155_v21 = vpop.f32.mrf.mxu0  ;;  %v204_v63 = vld [vmem:[#allocation2 + $0x218] sm:$0xff]  ;;  %v4026_v3 = vcombine.high %v268_v61, %v272_v62  ;;  %v4025_v10 = vcombine.low %v268_v61, %v272_v62 }
 0x172   :  { %v4975_v24 = vadd.f32 %v2194_v14, %v2154_v13  ;;  %v2196_v25 = vpop.f32.mrf.mxu1  ;;  %2530 = vmatpush1.bf16.msra.mxu0 %v4073_v9  ;;  %v208_v0 = vld [vmem:[#allocation2 + $0x238] sm:$0xff] }
 0x173   :  { %2505 = vmatpush2.bf16.msra.mxu1 %v4009_v11  ;;  %v2156_v26 = vpop.f32.mrf.mxu0  ;;  %2531 = vmatprep.subr.bf16.mxu0 %v4066_v12  ;;  %v3962_v5 = vcombine.high %v204_v63, %v208_v0  ;;  %v392_v7 = vld [vmem:[#allocation2 + $0x7f8] sm:$0xff]  ;;  %v3961_v11 = vcombine.low %v204_v63, %v208_v0  ;;  %v4202_v25 = vcombine.high %v444_v17, %v448_v20 }
 0x174   :  { %v2197_v54 = vpop.f32.mrf.mxu1  ;;  %2506 = vmatprep.subr.bf16.mxu1 %v4002_v15  ;;  %v452_v8 = vld [vmem:[#allocation2 + $0x9d8] sm:$0xff]  ;;  %v4146_v12 = vcombine.high %v388_v6, %v392_v7  ;;  %v4145_v21 = vcombine.low %v388_v6, %v392_v7 }
 0x175   :  { %v456_v9 = vld [vmem:[#allocation2 + $0x9f8] sm:$0xff] }
 0x176   :  { %2532 = vmatpush1.bf16.msra.mxu0 %v4065_v59  ;;  %v4210_v13 = vcombine.high %v452_v8, %v456_v9  ;;  %v380_v14 = vld [vmem:[#allocation2 + $0x798] sm:$0xff]  ;;  %v4209_v22 = vcombine.low %v452_v8, %v456_v9 }
 0x177   :  { %2507 = vmatpush2.bf16.msra.mxu1 %v4001_v27  ;;  %2533 = vmatprep.subr.bf16.mxu0 %v4058_v53  ;;  %v384_v15 = vld [vmem:[#allocation2 + $0x7b8] sm:$0xff] }
 0x178   :  { %2508 = vmatprep.subr.bf16.mxu1 %v3994_v28  ;;  %v4138_v23 = vcombine.high %v380_v14, %v384_v15  ;;  %v372_v59 = vld [vmem:[#allocation2 + $0x758] sm:$0xff]  ;;  %v4137_v29 = vcombine.low %v380_v14, %v384_v15 }
 0x179   :  { %v376_v26 = vld [vmem:[#allocation2 + $0x778] sm:$0xff] }
 0x17a   :  { %2534 = vmatpush1.bf16.msra.mxu0 %v4057_v33  ;;  %v436_v53 = vld [vmem:[#allocation2 + $0x958] sm:$0xff]  ;;  %v4130_v32 = vcombine.high %v372_v59, %v376_v26 }
 0x17b   :  { %2509 = vmatpush2.bf16.msra.mxu1 %v3993_v35  ;;  %2535 = vmatprep.subr.bf16.mxu0 %v4050_v36  ;;  %v440_v54 = vld [vmem:[#allocation2 + $0x978] sm:$0xff] }
 0x17c   :  { %2510 = vmatprep.subr.bf16.mxu1 %v3986_v38  ;;  %v4194_v35 = vcombine.high %v436_v53, %v440_v54  ;;  %v364_v36 = vld [vmem:[#allocation2 + $0x718] sm:$0xff]  ;;  %v4193_v42 = vcombine.low %v436_v53, %v440_v54  ;;  %v4453_v53 = vld [vmem:[#allocation6 + $0x7c] ss:$12 sps:$4 sm:$0xff]  }
 0x17d   :  { %v368_v38 = vld [vmem:[#allocation2 + $0x738] sm:$0xff] }
 0x17e   :  { %2536 = vmatpush1.bf16.msra.mxu0 %v4049_v43  ;;  %v4122_v43 = vcombine.high %v364_v36, %v368_v38  ;;  %v424_v49 = vld [vmem:[#allocation2 + $0x8f8] sm:$0xff]  ;;  %v4121_v50 = vcombine.low %v364_v36, %v368_v38  ;;  %v4459_v36 = vld [vmem:[#allocation6 + $0x4c] ss:$12 sps:$4 sm:$0xff]  }
 0x17f   :  { %2511 = vmatpush2.bf16.msra.mxu1 %v3985_v44  ;;  %2537 = vmatprep.subr.bf16.mxu0 %v4042_v45  ;;  %v4186_v44 = vcombine.high %v428_v39, %v432_v40  ;;  %v360_v45 = vld [vmem:[#allocation2 + $0x6f8] sm:$0xff]  ;;  %v4497_v38 = vld [vmem:[#allocation6 + $0x22c] ss:$12 sps:$4 sm:$0xff]  }
 0x180   :  { %2512 = vmatprep.subr.bf16.mxu1 %v3978_v47  ;;  %v420_v47 = vld [vmem:[#allocation2 + $0x8d8] sm:$0xff] }
 0x181   :  { %v4178_v55 = vcombine.high %v420_v47, %v424_v49  ;;  %v4177_v62 = vcombine.low %v420_v47, %v424_v49  ;;  %v4512_v47 = vld [vmem:[#allocation6 + $0x1e4] ss:$12 sps:$4 sm:$0xff]   ;;  %v473_v49 = vsub.s32 3, %v4952_v37 }
 0x182   :  { %2538 = vmatpush1.bf16.msra.mxu0 %v4041_v18  ;;  %v348_v18 = vld [vmem:[#allocation2 + $0x698] sm:$0xff] }
 0x183   :  { %2513 = vmatpush2.bf16.msra.mxu1 %v3977_v56  ;;  %2539 = vmatprep.subr.bf16.mxu0 %v4034_v57  ;;  %v352_v56 = vld [vmem:[#allocation2 + $0x6b8] sm:$0xff] }
 0x184   :  { %2514 = vmatprep.subr.bf16.mxu1 %v3970_v60  ;;  %v412_v57 = vld [vmem:[#allocation2 + $0x898] sm:$0xff]  ;;  %v4106_v63 = vcombine.high %v348_v18, %v352_v56  ;;  %v4105_v6 = vcombine.low %v348_v18, %v352_v56  ;;  %v4517_v18 = vld [vmem:[#allocation6 + $0x1cc] ss:$12 sps:$4 sm:$0xff]   ;;  %v474_v56 = vrot.slane %v4957_v48, %v473_v49 }
 0x185   :  { %v416_v60 = vld [vmem:[#allocation2 + $0x8b8] sm:$0xff]  ;;  %v4551_v49 = vld [vmem:[#allocation6 + $0x258] ss:$12 sps:$4 sm:$0xff]  }
 0x186   :  { %2540 = vmatpush1.bf16.msra.mxu0 %v4033_v1  ;;  %v4170_v0 = vcombine.high %v412_v57, %v416_v60  ;;  %v340_v1 = vld [vmem:[#allocation2 + $0x658] sm:$0xff]  ;;  %v4169_v7 = vcombine.low %v412_v57, %v416_v60 }
 0x187   :  { %2515 = vmatpush2.bf16.msra.mxu1 %v3969_v2  ;;  %2541 = vmatprep.subr.bf16.mxu0 %v4026_v3  ;;  %v344_v2 = vld [vmem:[#allocation2 + $0x678] sm:$0xff] }
 0x188   :  { %2516 = vmatprep.subr.bf16.mxu1 %v3962_v5  ;;  %v404_v3 = vld [vmem:[#allocation2 + $0x858] sm:$0xff]  ;;  %v4098_v8 = vcombine.high %v340_v1, %v344_v2  ;;  %v4097_v14 = vcombine.low %v340_v1, %v344_v2 }
 0x189   :  { %v408_v5 = vld [vmem:[#allocation2 + $0x878] sm:$0xff] }
 0x18a   :  { %2542 = vmatpush1.bf16.msra.mxu0 %v4025_v10  ;;  %v4162_v9 = vcombine.high %v404_v3, %v408_v5  ;;  %v332_v10 = vld [vmem:[#allocation2 + $0x618] sm:$0xff]  ;;  %v4161_v15 = vcombine.low %v404_v3, %v408_v5 }
 0x18b   :  { %2517 = vmatpush2.bf16.msra.mxu1 %v3961_v11  ;;  %2543 = vmatprep.subr.bf16.mxu0 %v4146_v12  ;;  %v336_v11 = vld [vmem:[#allocation2 + $0x638] sm:$0xff] }
 0x18c   :  { %2568 = vmatprep.subr.bf16.mxu1 %v4210_v13  ;;  %v396_v12 = vld [vmem:[#allocation2 + $0x818] sm:$0xff]  ;;  %v4090_v17 = vcombine.high %v332_v10, %v336_v11 }
 0x18d   :  { %v2233_v27 = vpop.f32.mrf.mxu0  ;;  %v400_v13 = vld [vmem:[#allocation2 + $0x838] sm:$0xff] }
 0x18e   :  { %v4978_v28 = vadd.f32 %v2233_v27, %v4973_v58  ;;  %2519 = vmatmul.mubr.bf16.vlgmr.msra.gmra.mxu1 %v4925_v16  ;;  %2544 = vmatpush2.bf16.msra.mxu0 %v4145_v21  ;;  %v4129_v16 = vcombine.low %v372_v59, %v376_v26  ;;  %v4154_v20 = vcombine.high %v396_v12, %v400_v13  ;;  %v4450_v59 = vld [vmem:[#allocation6 + $0x94] ss:$12 sps:$4 sm:$0xff]   ;;  %v4448_v27 = vld [vmem:[#allocation6 + $0x90] ss:$12 sps:$4 sm:$0xff]  }
 0x18f   :  { %2569 = vmatpush1.bf16.msra.mxu1 %v4209_v22  ;;  %v2235_v30 = vpop.f32.mrf.mxu0  ;;  %2545 = vmatprep.subr.bf16.mxu0 %v4138_v23  ;;  %v4089_v21 = vcombine.low %v332_v10, %v336_v11  ;;  %v4153_v22 = vcombine.low %v396_v12, %v400_v13  ;;  %v4447_v23 = vld [vmem:[#allocation6 + $0xac] ss:$12 sps:$4 sm:$0xff]   ;;  %v4469_v57 = vld [vmem:[#allocation6 + $0x168] ss:$12 sps:$4 sm:$0xff]   ;;  %v4472_v5 = vld [vmem:[#allocation6 + $0x150] ss:$12 sps:$4 sm:$0xff]  }
 0x190   :  { %v4982_v33 = vadd.f32 %v2235_v30, %v4975_v24  ;;  %2570 = vmatprep.subr.bf16.mxu1 %v4202_v25  ;;  %2600 = vmatprep.mubr.bf16.mxu1 %v4828_v34  ;;  %v356_v24 = vld [vmem:[#allocation2 + $0x6d8] sm:$0xff]  ;;  %v4185_v34 = vcombine.low %v428_v39, %v432_v40  ;;  %v4451_v30 = vld [vmem:[#allocation6 + $0x78] ss:$12 sps:$4 sm:$0xff]   ;;  %v4527_v13 = vld [vmem:[#allocation6 + $0x19c] ss:$12 sps:$4 sm:$0xff]  }
 0x191   :  { %v2237_v58 = vpop.f32.mrf.mxu0  ;;  %v4114_v52 = vcombine.high %v356_v24, %v360_v45  ;;  %v4113_v61 = vcombine.low %v356_v24, %v360_v45  ;;  %v4445_v25 = vld [vmem:[#allocation6 + $0xa8] ss:$12 sps:$4 sm:$0xff]   ;;  %v4460_v40 = vld [vmem:[#allocation6 + $0x30] ss:$12 sps:$4 sm:$0xff]   ;;  %v469_v45 = vsub.s32 2, %v4952_v37 }
 0x192   :  { %2546 = vmatpush2.bf16.msra.mxu0 %v4137_v29  ;;  %v4495_v58 = vld [vmem:[#allocation6 + $0x228] ss:$12 sps:$4 sm:$0xff]   ;;  %v4468_v24 = vld [vmem:[#allocation6 + $0x4] ss:$12 sps:$4 sm:$0xff]  }
 0x193   :  { %2571 = vmatpush1.bf16.msra.mxu1 %v4201_v31  ;;  %v2238_v41 = vpop.f32.mrf.mxu0  ;;  %2547 = vmatprep.subr.bf16.mxu0 %v4130_v32  ;;  %v4456_v31 = vld [vmem:[#allocation6 + $0x64] ss:$12 sps:$4 sm:$0xff]   ;;  %v4502_v39 = vld [vmem:[#allocation6 + $0x214] ss:$12 sps:$4 sm:$0xff]  }
 0x194   :  { %2572 = vmatprep.subr.bf16.mxu1 %v4194_v35  ;;  %v4454_v35 = vld [vmem:[#allocation6 + $0x60] ss:$12 sps:$4 sm:$0xff]   ;;  %v4465_v41 = vld [vmem:[#allocation6 + $0x1c] ss:$12 sps:$4 sm:$0xff]  }
 0x195   :  { %v4515_v60 = vld [vmem:[#allocation6 + $0x1c8] ss:$12 sps:$4 sm:$0xff]  }
 0x196   :  { %2548 = vmatpush2.bf16.msra.mxu0 %v4129_v16  ;;  %v4500_v16 = vld [vmem:[#allocation6 + $0x210] ss:$12 sps:$4 sm:$0xff]  }
 0x197   :  { %2573 = vmatpush1.bf16.msra.mxu1 %v4193_v42  ;;  %2549 = vmatprep.subr.bf16.mxu0 %v4122_v43  ;;  %v4507_v42 = vld [vmem:[#allocation6 + $0x1fc] ss:$12 sps:$4 sm:$0xff]   ;;  %v4463_v43 = vld [vmem:[#allocation6 + $0x18] ss:$12 sps:$4 sm:$0xff]  }
 0x198   :  { %2574 = vmatprep.subr.bf16.mxu1 %v4186_v44  ;;  %v4505_v44 = vld [vmem:[#allocation6 + $0x1f8] ss:$12 sps:$4 sm:$0xff]  }
 0x19a   :  { %2550 = vmatpush2.bf16.msra.mxu0 %v4121_v50  ;;  %v4466_v50 = vld [vmem:[#allocation6] ss:$12 sps:$4 sm:$0xff]  }
 0x19b   :  { %2575 = vmatpush1.bf16.msra.mxu1 %v4185_v34  ;;  %2551 = vmatprep.subr.bf16.mxu0 %v4114_v52  ;;  %v4510_v34 = vld [vmem:[#allocation6 + $0x1e0] ss:$12 sps:$4 sm:$0xff]  }
 0x19c   :  { %2576 = vmatprep.subr.bf16.mxu1 %v4178_v55  ;;  %v4471_v52 = vld [vmem:[#allocation6 + $0x16c] ss:$12 sps:$4 sm:$0xff]   ;;  %v470_v55 = vrot.slane %v4957_v48, %v469_v45 }
 0x19e   :  { %2552 = vmatpush2.bf16.msra.mxu0 %v4113_v61  ;;  %v4474_v61 = vld [vmem:[#allocation6 + $0x154] ss:$12 sps:$4 sm:$0xff]  }
 0x19f   :  { %2577 = vmatpush1.bf16.msra.mxu1 %v4177_v62  ;;  %2553 = vmatprep.subr.bf16.mxu0 %v4106_v63 }
 0x1a0   :  { %2578 = vmatprep.subr.bf16.mxu1 %v4170_v0  ;;  %v4522_v0 = vld [vmem:[#allocation6 + $0x1b4] ss:$12 sps:$4 sm:$0xff]  }
 0x1a2   :  { %2554 = vmatpush2.bf16.msra.mxu0 %v4105_v6  ;;  %v4520_v6 = vld [vmem:[#allocation6 + $0x1b0] ss:$12 sps:$4 sm:$0xff]  }
 0x1a3   :  { %2579 = vmatpush1.bf16.msra.mxu1 %v4169_v7  ;;  %2555 = vmatprep.subr.bf16.mxu0 %v4098_v8  ;;  %v4477_v8 = vld [vmem:[#allocation6 + $0x13c] ss:$12 sps:$4 sm:$0xff]  }
 0x1a4   :  { %2580 = vmatprep.subr.bf16.mxu1 %v4162_v9 }
 0x1a6   :  { %2556 = vmatpush2.bf16.msra.mxu0 %v4097_v14 }
 0x1a7   :  { %2581 = vmatpush1.bf16.msra.mxu1 %v4161_v15  ;;  %2557 = vmatprep.subr.bf16.mxu0 %v4090_v17  ;;  %v4475_v17 = vld [vmem:[#allocation6 + $0x138] ss:$12 sps:$4 sm:$0xff]  }
 0x1a8   :  { %2582 = vmatprep.subr.bf16.mxu1 %v4154_v20  ;;  %v4525_v20 = vld [vmem:[#allocation6 + $0x198] ss:$12 sps:$4 sm:$0xff]  }
 0x1aa   :  { %2558 = vmatpush2.bf16.msra.mxu0 %v4089_v21 }
 0x1ab   :  { %2583 = vmatpush1.bf16.msra.mxu1 %v4153_v22  ;;  %3278 = vmatprep.subr.bf16.mxu0 %v4447_v23  ;;  %v4480_v22 = vld [vmem:[#allocation6 + $0x124] ss:$12 sps:$4 sm:$0xff]  }
 0x1ac   :  { %3319 = vmatprep.subr.bf16.mxu1 %v4497_v38  ;;  %v4489_v38 = vld [vmem:[#allocation6 + $0xdc] ss:$12 sps:$4 sm:$0xff]  }
 0x1ad   :  { %2560 = vmatmul.mubr.bf16.vlgmr.msra.gmra.mxu0 %v4929_v19  ;;  %v4457_v19 = vld [vmem:[#allocation6 + $0x48] ss:$12 sps:$4 sm:$0xff]  }
 0x1ae   :  { %v2274_v26 = vpop.f32.mrf.mxu1  ;;  %2601 = vmatmul.mubr.bf16.vlgmr.msra.gmra.mxu1 %v4969_v4  ;;  %3279 = vmatpush1.bf16.msra.mxu0 %v4445_v25  ;;  %v4462_v4 = vld [vmem:[#allocation6 + $0x34] ss:$12 sps:$4 sm:$0xff]   ;;  %v4532_v25 = vld [vmem:[#allocation6 + $0x184] ss:$12 sps:$4 sm:$0xff]  }
 0x1af   :  { %3280 = vmatprep.subr.bf16.mxu0 %v4450_v59  ;;  %3320 = vmatpush1.bf16.msra.mxu1 %v4495_v58  ;;  %v2275_v62 = vadd.f32 %v2274_v26, %v470_v55  ;;  %v4478_v59 = vld [vmem:[#allocation6 + $0x120] ss:$12 sps:$4 sm:$0xff]   ;;  %v4544_v58 = vld [vmem:[#allocation6 + $0x2a4] ss:$12 sps:$4 sm:$0xff]  }
 0x1b0   :  { %v2276_v54 = vpop.f32.mrf.mxu1  ;;  %3321 = vmatprep.subr.bf16.mxu1 %v4502_v39  ;;  %v4530_v26 = vld [vmem:[#allocation6 + $0x180] ss:$12 sps:$4 sm:$0xff]   ;;  %v4492_v39 = vld [vmem:[#allocation6 + $0xc4] ss:$12 sps:$4 sm:$0xff]  }
 0x1b1   :  { %v2277_v1 = vadd.f32 %v2276_v54, %v474_v56  ;;  %v4535_v54 = vld [vmem:[#allocation6 + $0x2ec] ss:$12 sps:$4 sm:$0xff]  }
 0x1b2   :  { %v2278_v29 = vpop.f32.mrf.mxu1  ;;  %3281 = vmatpush1.bf16.msra.mxu0 %v4448_v27  ;;  %v4483_v27 = vld [vmem:[#allocation6 + $0x10c] ss:$12 sps:$4 sm:$0xff]  }
 0x1b3   :  { %3282 = vmatprep.subr.bf16.mxu0 %v4453_v53  ;;  %3322 = vmatpush1.bf16.msra.mxu1 %v4500_v16  ;;  %v4533_v53 = vld [vmem:[#allocation6 + $0x2e8] ss:$12 sps:$4 sm:$0xff]   ;;  %v4547_v16 = vld [vmem:[#allocation6 + $0x28c] ss:$12 sps:$4 sm:$0xff]  }
 0x1b4   :  { %v2279_v32 = vpop.f32.mrf.mxu1  ;;  %3323 = vmatprep.subr.bf16.mxu1 %v4507_v42  ;;  %v4481_v29 = vld [vmem:[#allocation6 + $0x108] ss:$12 sps:$4 sm:$0xff]   ;;  %v4493_v42 = vld [vmem:[#allocation6 + $0x170] ss:$12 sps:$4 sm:$0xff]  }
 0x1b5   :  { %v4536_v32 = vld [vmem:[#allocation6 + $0x2d0] ss:$12 sps:$4 sm:$0xff]  }
 0x1b6   :  { %3283 = vmatpush1.bf16.msra.mxu0 %v4451_v30  ;;  %v4538_v30 = vld [vmem:[#allocation6 + $0x2d4] ss:$12 sps:$4 sm:$0xff]  }
 0x1b7   :  { %3284 = vmatprep.subr.bf16.mxu0 %v4456_v31  ;;  %3324 = vmatpush1.bf16.msra.mxu1 %v4505_v44  ;;  %v4486_v31 = vld [vmem:[#allocation6 + $0xf4] ss:$12 sps:$4 sm:$0xff]  }
 0x1b8   :  { %3325 = vmatprep.subr.bf16.mxu1 %v4512_v47  ;;  %v4550_v44 = vld [vmem:[#allocation6 + $0x274] ss:$12 sps:$4 sm:$0xff]   ;;  %v4553_v47 = vld [vmem:[#allocation6 + $0x25c] ss:$12 sps:$4 sm:$0xff]  }
 0x1ba   :  { %3285 = vmatpush1.bf16.msra.mxu0 %v4454_v35  ;;  %v4541_v35 = vld [vmem:[#allocation6 + $0x2bc] ss:$12 sps:$4 sm:$0xff]  }
 0x1bb   :  { %3286 = vmatprep.subr.bf16.mxu0 %v4459_v36  ;;  %3326 = vmatpush1.bf16.msra.mxu1 %v4510_v34  ;;  %v4484_v36 = vld [vmem:[#allocation6 + $0xf0] ss:$12 sps:$4 sm:$0xff]   ;;  %v4554_v34 = vld [vmem:[#allocation6 + $0x240] ss:$12 sps:$4 sm:$0xff]  }
 0x1bc   :  { %3327 = vmatprep.subr.bf16.mxu1 %v4517_v18 }
 0x1be   :  { %3287 = vmatpush1.bf16.msra.mxu0 %v4457_v19  ;;  %v4539_v19 = vld [vmem:[#allocation6 + $0x2b8] ss:$12 sps:$4 sm:$0xff]  }
 0x1bf   :  { %3288 = vmatprep.subr.bf16.mxu0 %v4462_v4  ;;  %3328 = vmatpush1.bf16.msra.mxu1 %v4515_v60  ;;  %v4487_v4 = vld [vmem:[#allocation6 + $0xd8] ss:$12 sps:$4 sm:$0xff]  }
 0x1c0   :  { %3329 = vmatprep.subr.bf16.mxu1 %v4522_v0  ;;  %v477_v0 = vsub.s32 4, %v4952_v37 }
 0x1c2   :  { %3289 = vmatpush1.bf16.msra.mxu0 %v4460_v40  ;;  %v4542_v40 = vld [vmem:[#allocation6 + $0x2a0] ss:$12 sps:$4 sm:$0xff]  }
 0x1c3   :  { %3290 = vmatprep.subr.bf16.mxu0 %v4465_v41  ;;  %3330 = vmatpush1.bf16.msra.mxu1 %v4520_v6  ;;  %v4490_v41 = vld [vmem:[#allocation6 + $0xc0] ss:$12 sps:$4 sm:$0xff]  }
 0x1c4   :  { %3331 = vmatprep.subr.bf16.mxu1 %v4527_v13 }
 0x1c6   :  { %3291 = vmatpush1.bf16.msra.mxu0 %v4463_v43  ;;  %v4545_v43 = vld [vmem:[#allocation6 + $0x288] ss:$12 sps:$4 sm:$0xff]  }
 0x1c7   :  { %3292 = vmatprep.subr.bf16.mxu0 %v4468_v24  ;;  %3332 = vmatpush1.bf16.msra.mxu1 %v4525_v20  ;;  %v4548_v24 = vld [vmem:[#allocation6 + $0x270] ss:$12 sps:$4 sm:$0xff]  }
 0x1c8   :  { %3333 = vmatprep.subr.bf16.mxu1 %v4532_v25 }
 0x1ca   :  { %3293 = vmatpush1.bf16.msra.mxu0 %v4466_v50  ;;  %v4556_v50 = vld [vmem:[#allocation6 + $0x244] ss:$12 sps:$4 sm:$0xff]  }
 0x1cb   :  { %3294 = vmatprep.subr.bf16.mxu0 %v4471_v52  ;;  %3334 = vmatpush1.bf16.msra.mxu1 %v4530_v26  ;;  %v4557_v52 = vld [vmem:[#allocation6 + $0x2f0] ss:$12 sps:$4 sm:$0xff]  }
 0x1cc   :  { %3335 = vmatprep.subr.bf16.mxu1 %v4535_v54  ;;  %v4503_v54 = vld [vmem:[#allocation6 + $0x140] ss:$12 sps:$4 sm:$0xff]  }
 0x1cd   :  { %v2315_v63 = vpop.f32.mrf.mxu0 }
 0x1ce   :  { %v2316_v2 = vadd.f32 %v2315_v63, %v2275_v62  ;;  %v2356_v3 = vpop.f32.mrf.mxu1  ;;  %3295 = vmatpush2.bf16.msra.mxu0 %v4469_v57 }
 0x1cf   :  { %v2317_v7 = vpop.f32.mrf.mxu0  ;;  %3296 = vmatprep.subr.bf16.mxu0 %v4474_v61  ;;  %3336 = vmatpush2.bf16.msra.mxu1 %v4533_v53  ;;  %v4499_v53 = vld [vmem:[#allocation6 + $0x98] ss:$12 sps:$4 sm:$0xff]  }
 0x1d0   :  { %v4993_v9 = vadd.f32 %v2356_v3, %v2316_v2  ;;  %v2318_v10 = vadd.f32 %v2317_v7, %v2277_v1  ;;  %v2358_v11 = vpop.f32.mrf.mxu1  ;;  %3337 = vmatprep.subr.bf16.mxu1 %v4538_v30  ;;  %v481_v1 = vsub.s32 5, %v4952_v37  ;;  %v478_v2 = vrot.slane %v4957_v48, %v477_v0  ;;  %v4513_v30 = vld [vmem:[#allocation6 + $0x110] ss:$12 sps:$4 sm:$0xff]  }
 0x1d1   :  { %v2319_v12 = vpop.f32.mrf.mxu0 }
 0x1d2   :  { %v4995_v14 = vadd.f32 %v2358_v11, %v2318_v10  ;;  %v2360_v15 = vpop.f32.mrf.mxu1  ;;  %3297 = vmatpush2.bf16.msra.mxu0 %v4472_v5  ;;  %v482_v3 = vrot.slane %v4957_v48, %v481_v1 }
 0x1d3   :  { %v2320_v21 = vpop.f32.mrf.mxu0  ;;  %3298 = vmatprep.subr.bf16.mxu0 %v4477_v8  ;;  %3338 = vmatpush2.bf16.msra.mxu1 %v4536_v32  ;;  %v4518_v32 = vld [vmem:[#allocation6 + $0xf8] ss:$12 sps:$4 sm:$0xff]  }
 0x1d4   :  { %v2361_v23 = vpop.f32.mrf.mxu1  ;;  %3339 = vmatprep.subr.bf16.mxu1 %v4541_v35  ;;  %v4519_v35 = vld [vmem:[#allocation6 + $0x38] ss:$12 sps:$4 sm:$0xff]  }
 0x1d6   :  { %3299 = vmatpush2.bf16.msra.mxu0 %v4475_v17 }
 0x1d7   :  { %3300 = vmatprep.subr.bf16.mxu0 %v4480_v22  ;;  %3340 = vmatpush2.bf16.msra.mxu1 %v4539_v19  ;;  %v4524_v19 = vld [vmem:[#allocation6 + $0x20] ss:$12 sps:$4 sm:$0xff]  }
 0x1d8   :  { %3341 = vmatprep.subr.bf16.mxu1 %v4544_v58  ;;  %v4528_v58 = vld [vmem:[#allocation6 + $0xc8] ss:$12 sps:$4 sm:$0xff]  }
 0x1da   :  { %3301 = vmatpush2.bf16.msra.mxu0 %v4478_v59  ;;  %v4494_v59 = vld [vmem:[#allocation6 + $0xb0] ss:$12 sps:$4 sm:$0xff]  }
 0x1db   :  { %3302 = vmatprep.subr.bf16.mxu0 %v4483_v27  ;;  %3342 = vmatpush2.bf16.msra.mxu1 %v4542_v40  ;;  %v4498_v27 = vld [vmem:[#allocation6 + $0x158] ss:$12 sps:$4 sm:$0xff]   ;;  %v4529_v40 = vld [vmem:[#allocation6 + $0x8] ss:$12 sps:$4 sm:$0xff]  }
 0x1dc   :  { %3343 = vmatprep.subr.bf16.mxu1 %v4547_v16 }
 0x1de   :  { %3303 = vmatpush2.bf16.msra.mxu0 %v4481_v29  ;;  %v4508_v29 = vld [vmem:[#allocation6 + $0x128] ss:$12 sps:$4 sm:$0xff]  }
 0x1df   :  { %3304 = vmatprep.subr.bf16.mxu0 %v4486_v31  ;;  %3344 = vmatpush2.bf16.msra.mxu1 %v4545_v43  ;;  %v4514_v31 = vld [vmem:[#allocation6 + $0x50] ss:$12 sps:$4 sm:$0xff]  }
 0x1e0   :  { %3345 = vmatprep.subr.bf16.mxu1 %v4550_v44 }
 0x1e2   :  { %3305 = vmatpush2.bf16.msra.mxu0 %v4484_v36  ;;  %v4523_v36 = vld [vmem:[#allocation6 + $0xe0] ss:$12 sps:$4 sm:$0xff]  }
 0x1e3   :  { %3306 = vmatprep.subr.bf16.mxu0 %v4489_v38  ;;  %3346 = vmatpush2.bf16.msra.mxu1 %v4548_v24 }
 0x1e4   :  { %3347 = vmatprep.subr.bf16.mxu1 %v4553_v47 }
 0x1e6   :  { %3307 = vmatpush2.bf16.msra.mxu0 %v4487_v4 }
 0x1e7   :  { %3308 = vmatprep.subr.bf16.mxu0 %v4492_v39  ;;  %3348 = vmatpush2.bf16.msra.mxu1 %v4551_v49 }
 0x1e8   :  { %3349 = vmatprep.subr.bf16.mxu1 %v4556_v50 }
 0x1ea   :  { %3309 = vmatpush2.bf16.msra.mxu0 %v4490_v41  ;;  %v485_v41 = vsub.s32 6, %v4952_v37 }
 0x1eb   :  { %4357 = vmatprep.subr.bf16.mxu0 %v4493_v42  ;;  %3350 = vmatpush2.bf16.msra.mxu1 %v4554_v34  ;;  %v489_v42 = vsub.s32 7, %v4952_v37  ;;  %v4635_v37 = vld [vmem:[#allocation12 + $0x40] sm:$0xff]  }
 0x1ec   :  { %4379 = vmatprep.subr.bf16.mxu1 %v4557_v52  ;;  %v486_v43 = vrot.slane %v4957_v48, %v485_v41  ;;  %v4603_v41 = vld [vmem:[#allocation9 + $0xd0] ss:$8 sps:$4 sm:$0xff]  }
 0x1ed   :  { %v490_v44 = vrot.slane %v4957_v48, %v489_v42  ;;  %v4608_v42 = vld [vmem:[#allocation9 + $0xc4] ss:$8 sps:$4 sm:$0xff]  }
 0x20d   :  { %v2397_v55 = vpop.f32.mrf.mxu0 }
 0x20e   :  { %v2438_v18 = vpop.f32.mrf.mxu1  ;;  %v2398_v5 = vadd.f32 %v2397_v55, %v478_v2 }
 0x20f   :  { %v2399_v56 = vpop.f32.mrf.mxu0 }
 0x210   :  { %v2440_v57 = vpop.f32.mrf.mxu1  ;;  %v2400_v6 = vadd.f32 %v2399_v56, %v482_v3  ;;  %v2439_v7 = vadd.f32 %v2438_v18, %v2398_v5  ;;  %v4558_v5 = vld [vmem:[#allocation6 + $0x230] ss:$12 sps:$4 sm:$0xff]  }
 0x211   :  { %v2401_v60 = vpop.f32.mrf.mxu0 }
 0x212   :  { %v2442_v61 = vpop.f32.mrf.mxu1  ;;  %v2441_v10 = vadd.f32 %v2440_v57, %v2400_v6 }
 0x213   :  { %v2402_v62 = vpop.f32.mrf.mxu0 }
 0x214   :  { %v2443_v63 = vpop.f32.mrf.mxu1 }
 0x22d   :  { %v2479_v8 = vpop.f32.mrf.mxu0 }
 0x22e   :  { %v2480_v11 = vadd.f32 %v2479_v8, %v2439_v7  ;;  %v4559_v7 = vld [vmem:[#allocation6 + $0x2d8] ss:$12 sps:$4 sm:$0xff]  }
 0x22f   :  { %v2481_v12 = vpop.f32.mrf.mxu0  ;;  %v4560_v8 = vld [vmem:[#allocation6 + $0x218] ss:$12 sps:$4 sm:$0xff]  }
 0x230   :  { %v2609_v13 = vmax.f32 %v4978_v28, %v2480_v11  ;;  %v2482_v15 = vadd.f32 %v2481_v12, %v2441_v10  ;;  %v4504_v28 = vld [vmem:[#allocation6 + $0x80] ss:$12 sps:$4 sm:$0xff]   ;;  %v4563_v11 = vld [vmem:[#allocation6 + $0x2a8] ss:$12 sps:$4 sm:$0xff]   ;;  %v4565_v12 = vld [vmem:[#allocation6 + $0x290] ss:$12 sps:$4 sm:$0xff]  }
 0x231   :  { %v2483_v17 = vpop.f32.mrf.mxu0  ;;  %v4561_v10 = vld [vmem:[#allocation6 + $0x2c0] ss:$12 sps:$4 sm:$0xff]  }
 0x232   :  { %v2610_v20 = vmax.f32 %v4982_v33, %v2482_v15  ;;  %v2613_v21 = vmax.f32 %v2609_v13, 0.0  ;;  %v4509_v33 = vld [vmem:[#allocation6 + $0x68] ss:$12 sps:$4 sm:$0xff]   ;;  %v4566_v13 = vld [vmem:[#allocation6 + $0x1d0] ss:$12 sps:$4 sm:$0xff]  }
 0x233   :  { %v2484_v22 = vpop.f32.mrf.mxu0  ;;  %v4567_v15 = vld [vmem:[#allocation6 + $0x278] ss:$12 sps:$4 sm:$0xff]  }
 0x234   :  { %v2614_v23 = vmax.f32 %v2610_v20, 0.0  ;;  %v2617_v26 = vpack.c.bf16 %v2613_v21, %v2613_v21  ;;  %v4568_v17 = vld [vmem:[#allocation6 + $0x1b8] ss:$12 sps:$4 sm:$0xff]   ;;  %v4569_v20 = vld [vmem:[#allocation6 + $0x260] ss:$12 sps:$4 sm:$0xff]  }
 0x235   :  { %v4570_v21 = vld [vmem:[#allocation6 + $0x1a0] ss:$12 sps:$4 sm:$0xff]   ;;  %v4571_v22 = vld [vmem:[#allocation6 + $0x248] ss:$12 sps:$4 sm:$0xff]  }
 0x236   :  { %v2618_v25 = vpack.c.bf16 %v2614_v23, %v2614_v23  ;;  %v4572_v23 = vld [vmem:[#allocation6 + $0x188] ss:$12 sps:$4 sm:$0xff]  }
 0x238   :  { %3310 = vmatprep.mubr.bf16.mxu0 %v2618_v25 }
 0x239   :  { %3311 = vmatmul.mubr.bf16.vlgmr.msra.gmra.mxu0 %v2617_v26 }
 0x23a   :  { %4358 = vmatpush3.bf16.msra.mxu0 %v4494_v59  ;;  %3392 = vmatprep.mubr.bf16.mxu0 %v2618_v25  ;;  %v4573_v25 = vld [vmem:[#allocation9 + $0x70] ss:$8 sps:$4 sm:$0xff]   ;;  %v4575_v59 = vld [vmem:[#allocation9 + $0x74] ss:$8 sps:$4 sm:$0xff]  }
 0x23b   :  { %4359 = vmatprep.subr.bf16.mxu0 %v4498_v27  ;;  %v4576_v27 = vld [vmem:[#allocation9 + $0x60] ss:$8 sps:$4 sm:$0xff]  }
 0x23e   :  { %4360 = vmatpush3.bf16.msra.mxu0 %v4499_v53  ;;  %v4581_v53 = vld [vmem:[#allocation9 + $0x54] ss:$8 sps:$4 sm:$0xff]  }
 0x23f   :  { %4361 = vmatprep.subr.bf16.mxu0 %v4503_v54  ;;  %v4579_v54 = vld [vmem:[#allocation9 + $0x50] ss:$8 sps:$4 sm:$0xff]  }
 0x242   :  { %4362 = vmatpush3.bf16.msra.mxu0 %v4504_v28  ;;  %v4584_v28 = vld [vmem:[#allocation9 + $0x44] ss:$8 sps:$4 sm:$0xff]  }
 0x243   :  { %4363 = vmatprep.subr.bf16.mxu0 %v4508_v29  ;;  %v4582_v29 = vld [vmem:[#allocation9 + $0x40] ss:$8 sps:$4 sm:$0xff]  }
 0x246   :  { %4364 = vmatpush3.bf16.msra.mxu0 %v4509_v33  ;;  %v4587_v33 = vld [vmem:[#allocation9 + $0x34] ss:$8 sps:$4 sm:$0xff]  }
 0x247   :  { %4365 = vmatprep.subr.bf16.mxu0 %v4513_v30  ;;  %v4585_v30 = vld [vmem:[#allocation9 + $0x30] ss:$8 sps:$4 sm:$0xff]  }
 0x24a   :  { %4366 = vmatpush3.bf16.msra.mxu0 %v4514_v31  ;;  %v4590_v31 = vld [vmem:[#allocation9 + $0x24] ss:$8 sps:$4 sm:$0xff]  }
 0x24b   :  { %4367 = vmatprep.subr.bf16.mxu0 %v4518_v32  ;;  %v4588_v32 = vld [vmem:[#allocation9 + $0x20] ss:$8 sps:$4 sm:$0xff]  }
 0x24e   :  { %v2520_v38 = vpop.f32.mrf.mxu1  ;;  %4368 = vmatpush3.bf16.msra.mxu0 %v4519_v35  ;;  %v4593_v35 = vld [vmem:[#allocation9 + $0x14] ss:$8 sps:$4 sm:$0xff]  }
 0x24f   :  { %4369 = vmatprep.subr.bf16.mxu0 %v4523_v36  ;;  %v2521_v24 = vadd.f32 %v2520_v38, %v486_v43  ;;  %v4591_v36 = vld [vmem:[#allocation9 + $0x10] ss:$8 sps:$4 sm:$0xff]   ;;  %v4596_v38 = vld [vmem:[#allocation9 + $0x4] ss:$8 sps:$4 sm:$0xff]   ;;  %v4606_v43 = vld [vmem:[#allocation9 + $0xc0] ss:$8 sps:$4 sm:$0xff]  }
 0x250   :  { %v2522_v4 = vpop.f32.mrf.mxu1 }
 0x251   :  { %v2523_v49 = vadd.f32 %v2522_v4, %v490_v44  ;;  %v4597_v4 = vld [vmem:[#allocation9 + $0xf0] ss:$8 sps:$4 sm:$0xff]   ;;  %v4611_v44 = vld [vmem:[#allocation9 + $0xb4] ss:$8 sps:$4 sm:$0xff]  }
 0x252   :  { %v2524_v39 = vpop.f32.mrf.mxu1  ;;  %4370 = vmatpush3.bf16.msra.mxu0 %v4524_v19  ;;  %v4594_v19 = vld [vmem:[#allocation9] ss:$8 sps:$4 sm:$0xff]  }
 0x253   :  { %4371 = vmatprep.subr.bf16.mxu0 %v4528_v58  ;;  %v4599_v58 = vld [vmem:[#allocation9 + $0xf4] ss:$8 sps:$4 sm:$0xff]   ;;  %v4602_v39 = vld [vmem:[#allocation9 + $0xe4] ss:$8 sps:$4 sm:$0xff]  }
 0x254   :  { %v2525_v16 = vpop.f32.mrf.mxu1 }
 0x255   :  { %v4605_v16 = vld [vmem:[#allocation9 + $0xd4] ss:$8 sps:$4 sm:$0xff]  }
 0x256   :  { %4372 = vmatpush3.bf16.msra.mxu0 %v4529_v40  ;;  %v4600_v40 = vld [vmem:[#allocation9 + $0xe0] ss:$8 sps:$4 sm:$0xff]  }
 0x257   :  { %3650 = vmatprep.subr.bf16.mxu0 %v4575_v59 }
 0x259   :  { %3393 = vmatmul.mubr.bf16.vlgmr.msra.gmra.mxu0 %v2617_v26  ;;  %v4578_v26 = vld [vmem:[#allocation9 + $0x64] ss:$8 sps:$4 sm:$0xff]  }
 0x25a   :  { %3651 = vmatpush1.bf16.msra.mxu0 %v4573_v25 }
 0x25b   :  { %3652 = vmatprep.subr.bf16.mxu0 %v4578_v26 }
 0x25e   :  { %3653 = vmatpush1.bf16.msra.mxu0 %v4576_v27 }
 0x25f   :  { %3654 = vmatprep.subr.bf16.mxu0 %v4581_v53 }
 0x262   :  { %3655 = vmatpush1.bf16.msra.mxu0 %v4579_v54 }
 0x263   :  { %3656 = vmatprep.subr.bf16.mxu0 %v4584_v28 }
 0x266   :  { %3657 = vmatpush1.bf16.msra.mxu0 %v4582_v29 }
 0x267   :  { %3658 = vmatprep.subr.bf16.mxu0 %v4587_v33 }
 0x26a   :  { %3659 = vmatpush1.bf16.msra.mxu0 %v4585_v30 }
 0x26b   :  { %3660 = vmatprep.subr.bf16.mxu0 %v4590_v31 }
 0x26d   :  { %v2561_v47 = vpop.f32.mrf.mxu0 }
 0x26e   :  { %v2562_v50 = vadd.f32 %v2561_v47, %v2521_v24  ;;  %v2602_v34 = vpop.f32.mrf.mxu1  ;;  %3661 = vmatpush1.bf16.msra.mxu0 %v4588_v32  ;;  %v4609_v24 = vld [vmem:[#allocation9 + $0xb0] ss:$8 sps:$4 sm:$0xff]   ;;  %v4614_v47 = vld [vmem:[#allocation9 + $0xa4] ss:$8 sps:$4 sm:$0xff]  }
 0x26f   :  { %v2563_v52 = vpop.f32.mrf.mxu0  ;;  %3662 = vmatprep.subr.bf16.mxu0 %v4593_v35 }
 0x270   :  { %v2603_v55 = vadd.f32 %v2602_v34, %v2562_v50  ;;  %v2564_v18 = vadd.f32 %v2563_v52, %v2523_v49  ;;  %v2604_v56 = vpop.f32.mrf.mxu1  ;;  %v4612_v49 = vld [vmem:[#allocation9 + $0xa0] ss:$8 sps:$4 sm:$0xff]   ;;  %v4617_v50 = vld [vmem:[#allocation9 + $0x94] ss:$8 sps:$4 sm:$0xff]   ;;  %v4615_v34 = vld [vmem:[#allocation9 + $0x90] ss:$8 sps:$4 sm:$0xff]  }
 0x271   :  { %v2565_v57 = vpop.f32.mrf.mxu0  ;;  %v4618_v52 = vld [vmem:[#allocation9 + $0x80] ss:$8 sps:$4 sm:$0xff]  }
 0x272   :  { %v2611_v60 = vmax.f32 %v4993_v9, %v2603_v55  ;;  %v2605_v61 = vadd.f32 %v2604_v56, %v2564_v18  ;;  %v2606_v62 = vpop.f32.mrf.mxu1  ;;  %v4562_v9 = vld [vmem:[#allocation6 + $0x200] ss:$12 sps:$4 sm:$0xff]   ;;  %3663 = vmatpush1.bf16.msra.mxu0 %v4591_v36  ;;  %v4620_v55 = vld [vmem:[#allocation9 + $0x84] ss:$8 sps:$4 sm:$0xff]   ;;  %v4623_v57 = vld [vmem:[#allocation12 + $0x70] sm:$0xff]  }
 0x273   :  { %v2566_v63 = vpop.f32.mrf.mxu0  ;;  %3664 = vmatprep.subr.bf16.mxu0 %v4596_v38  ;;  %v4621_v18 = vld [vmem:[#allocation12 + $0x78] sm:$0xff]   ;;  %v4626_v62 = vld [vmem:[#allocation12 + $0x28] sm:$0xff]  }
 0x274   :  { %v2612_v0 = vmax.f32 %v4995_v14, %v2605_v61  ;;  %v2607_v1 = vpop.f32.mrf.mxu1  ;;  %v2615_v2 = vmax.f32 %v2611_v60, 0.0  ;;  %v4564_v14 = vld [vmem:[#allocation6 + $0x1e8] ss:$12 sps:$4 sm:$0xff]   ;;  %v4622_v56 = vld [vmem:[#allocation12 + $0x38] sm:$0xff]  }
 0x275   :  { %v4624_v60 = vld [vmem:[#allocation12 + $0x30] sm:$0xff]   ;;  %v4625_v61 = vld [vmem:[#allocation12 + $0x68] sm:$0xff]   ;;  %v4627_v63 = vld [vmem:[#allocation12 + $0x60] sm:$0xff]  }
 0x276   :  { %v2616_v48 = vmax.f32 %v2612_v0, 0.0  ;;  %v2619_v6 = vpack.c.bf16 %v2615_v2, %v2615_v2  ;;  %3665 = vmatpush1.bf16.msra.mxu0 %v4594_v19  ;;  %v4628_v0 = vld [vmem:[#allocation12 + $0x20] sm:$0xff]   ;;  %v4629_v1 = vld [vmem:[#allocation12 + $0x58] sm:$0xff]  }
 0x277   :  { %3666 = vmatprep.subr.bf16.mxu0 %v4599_v58  ;;  %v4630_v2 = vld [vmem:[#allocation12 + $0x18] sm:$0xff]  }
 0x278   :  { %v2620_v3 = vpack.c.bf16 %v2616_v48, %v2616_v48 }
 0x27a   :  { %3351 = vmatprep.mubr.bf16.mxu1 %v2620_v3  ;;  %3667 = vmatpush2.bf16.msra.mxu0 %v4597_v4 }
 0x27b   :  { %3352 = vmatmul.mubr.bf16.vlgmr.msra.gmra.mxu1 %v2619_v6  ;;  %3668 = vmatprep.subr.bf16.mxu0 %v4602_v39  ;;  %v4633_v39 = vld [vmem:[#allocation12 + $0x48] sm:$0xff]  }
 0x27c   :  { %4380 = vmatpush3.bf16.msra.mxu1 %v4558_v5  ;;  %3432 = vmatprep.mubr.bf16.mxu1 %v2620_v3  ;;  %v4631_v3 = vld [vmem:[#allocation12 + $0x50] sm:$0xff]  }
 0x27d   :  { %4381 = vmatprep.subr.bf16.mxu1 %v4559_v7 }
 0x27e   :  { %3669 = vmatpush2.bf16.msra.mxu0 %v4600_v40  ;;  %v4634_v40 = vld [vmem:[#allocation12 + $0x8] sm:$0xff]  }
 0x27f   :  { %3670 = vmatprep.subr.bf16.mxu0 %v4605_v16  ;;  %v3478_v16 = vld [vmem:[#allocation10] sm:$0x3] }
 0x280   :  { %4382 = vmatpush3.bf16.msra.mxu1 %v4560_v8 }
 0x281   :  { %4383 = vmatprep.subr.bf16.mxu1 %v4561_v10 }
 0x282   :  { %3671 = vmatpush2.bf16.msra.mxu0 %v4603_v41  ;;  %v3483_v41 = vrot.slane %v3478_v16, %v4955_v46 }
 0x283   :  { %3672 = vmatprep.subr.bf16.mxu0 %v4608_v42  ;;  %v3487_v42 = vrot.slane %v3478_v16, %v4960_v51 }
 0x284   :  { %4384 = vmatpush3.bf16.msra.mxu1 %v4562_v9 }
 0x285   :  { %4385 = vmatprep.subr.bf16.mxu1 %v4563_v11 }
 0x286   :  { %3673 = vmatpush2.bf16.msra.mxu0 %v4606_v43 }
 0x287   :  { %3674 = vmatprep.subr.bf16.mxu0 %v4611_v44 }
 0x288   :  { %4386 = vmatpush3.bf16.msra.mxu1 %v4564_v14 }
 0x289   :  { %4387 = vmatprep.subr.bf16.mxu1 %v4565_v12 }
 0x28a   :  { %3675 = vmatpush2.bf16.msra.mxu0 %v4609_v24 }
 0x28b   :  { %3676 = vmatprep.subr.bf16.mxu0 %v4614_v47 }
 0x28c   :  { %4388 = vmatpush3.bf16.msra.mxu1 %v4566_v13  ;;  %v2749_v13 = vld [vmem:[#allocation7] sm:$0x7] }
 0x28d   :  { %4389 = vmatprep.subr.bf16.mxu1 %v4567_v15  ;;  %v2754_v15 = vrot.slane %v2749_v13, %v4955_v46  ;;  %v2762_v54 = vrot.slane %v2749_v13, %v469_v45  ;;  %v4636_v45 = vld [vmem:[#allocation12] sm:$0xff]  }
 0x28e   :  { %3677 = vmatpush2.bf16.msra.mxu0 %v4612_v49 }
 0x28f   :  { %3678 = vmatprep.subr.bf16.mxu0 %v4617_v50 }
 0x290   :  { %4390 = vmatpush3.bf16.msra.mxu1 %v4568_v17  ;;  %v2758_v17 = vrot.slane %v2749_v13, %v4960_v51 }
 0x291   :  { %4391 = vmatprep.subr.bf16.mxu1 %v4569_v20 }
 0x292   :  { %3679 = vmatpush2.bf16.msra.mxu0 %v4615_v34 }
 0x293   :  { %3680 = vmatprep.subr.bf16.mxu0 %v4620_v55 }
 0x294   :  { %4392 = vmatpush3.bf16.msra.mxu1 %v4570_v21 }
 0x295   :  { %4393 = vmatprep.subr.bf16.mxu1 %v4571_v22 }
 0x296   :  { %3681 = vmatpush2.bf16.msra.mxu0 %v4618_v52 }
 0x298   :  { %4394 = vmatpush3.bf16.msra.mxu1 %v4572_v23 }
 0x299   :  { %4401 = vmatprep.subr.bf16.mxu1 %v4621_v18 }
 0x29b   :  { %3433 = vmatmul.mubr.bf16.vlgmr.msra.gmra.mxu1 %v2619_v6  ;;  %v4632_v6 = vld [vmem:[#allocation12 + $0x10] sm:$0xff]  }
 0x29c   :  { %4402 = vmatpush3.bf16.msra.mxu1 %v4622_v56 }
 0x29d   :  { %4403 = vmatprep.subr.bf16.mxu1 %v4623_v57  ;;  %v4339_v57 = vld [vmem:[#allocation13] ss:$0 sm:$0xff] }
 0x2a0   :  { %4404 = vmatpush3.bf16.msra.mxu1 %v4624_v60 }
 0x2a1   :  { %4405 = vmatprep.subr.bf16.mxu1 %v4625_v61 }
 0x2a4   :  { %4406 = vmatpush3.bf16.msra.mxu1 %v4626_v62 }
 0x2a5   :  { %4407 = vmatprep.subr.bf16.mxu1 %v4627_v63 }
 0x2a8   :  { %4408 = vmatpush3.bf16.msra.mxu1 %v4628_v0 }
 0x2a9   :  { %4409 = vmatprep.subr.bf16.mxu1 %v4629_v1 }
 0x2ac   :  { %4410 = vmatpush3.bf16.msra.mxu1 %v4630_v2 }
 0x2ad   :  { %4411 = vmatprep.subr.bf16.mxu1 %v4631_v3 }
 0x2b0   :  { %4412 = vmatpush3.bf16.msra.mxu1 %v4632_v6 }
 0x2b1   :  { %4413 = vmatprep.subr.bf16.mxu1 %v4633_v39 }
 0x2b4   :  { %4414 = vmatpush3.bf16.msra.mxu1 %v4634_v40 }
 0x2b5   :  { %4415 = vmatprep.subr.bf16.mxu1 %v4635_v37 }
 0x2b8   :  { %4416 = vmatpush3.bf16.msra.mxu1 %v4636_v45 }
 0x2f9   :  { %v3312_v48 = vpop.f32.mrf.mxu0 }
 0x2fa   :  { %v3313_v21 = vadd.f32 %v3312_v48, %v2754_v15 }
 0x2fb   :  { %v3314_v5 = vpop.f32.mrf.mxu0 }
 0x2fc   :  { %v3315_v22 = vadd.f32 %v3314_v5, %v2758_v17 }
 0x2fd   :  { %v3316_v7 = vpop.f32.mrf.mxu0 }
 0x2ff   :  { %v3317_v8 = vpop.f32.mrf.mxu0 }
 0x319   :  { %v4373_v10 = vpop.f32.mrf.mxu0 }
 0x31b   :  { %v4374_v9 = vpop.f32.mrf.mxu0 }
 0x31c   :  { %v4375_v11 = vadd.f32 %v4374_v9, %v4373_v10 }
 0x31d   :  { %v4376_v14 = vpop.f32.mrf.mxu0 }
 0x31e   :  { %v3395_v33 = vadd.f32 %v4375_v11, %v2762_v54 }
 0x31f   :  { %v4377_v12 = vpop.f32.mrf.mxu0 }
 0x33b   :  { %v3353_v20 = vpop.f32.mrf.mxu1 }
 0x33c   :  { %v3354_v25 = vadd.f32 %v3353_v20, %v3313_v21 }
 0x33d   :  { %v3355_v23 = vpop.f32.mrf.mxu1 }
 0x33e   :  { %v3356_v59 = vadd.f32 %v3355_v23, %v3315_v22 }
 0x33f   :  { %v3357_v26 = vpop.f32.mrf.mxu1 }
 0x340   :  { %v3440_v27 = vmax.f32 %v3354_v25, %v3356_v59 }
 0x341   :  { %v3358_v53 = vpop.f32.mrf.mxu1 }
 0x342   :  { %v3442_v38 = vmax.f32 %v3440_v27, 0.0 }
 0x344   :  { %v3444_v4 = vpack.c.bf16 %v3442_v38, %v3442_v38 }
 0x35b   :  { %v4395_v28 = vpop.f32.mrf.mxu1 }
 0x35d   :  { %v4396_v29 = vpop.f32.mrf.mxu1 }
 0x35e   :  { %v4397_v30 = vadd.f32 %v4396_v29, %v4395_v28 }
 0x35f   :  { %v4398_v31 = vpop.f32.mrf.mxu1 }
 0x360   :  { %v3435_v32 = vadd.f32 %v4397_v30, %v3395_v33 }
 0x361   :  { %v4399_v35 = vpop.f32.mrf.mxu1 }
 0x362   :  { %v3441_v36 = vmax.f32 %v3356_v59, %v3435_v32 }
 0x364   :  { %v3443_v19 = vmax.f32 %v3441_v36, 0.0 }
 0x366   :  { %v3445_v58 = vpack.c.bf16 %v3443_v19, %v3443_v19 }
 0x368   :  { %3682 = vmatprep.mubr.bf16.mxu0 %v3445_v58 }
 0x369   :  { %3683 = vmatmul.mubr.bf16.vlgmr.msra.gmra.mxu0 %v3444_v4 }
 0x429   :  { %v3684_v43 = vpop.f32.mrf.mxu0 }
 0x42a   :  { %v3685_v44 = vadd.f32 %v3684_v43, %v3483_v41 }
 0x42b   :  { %v3686_v24 = vpop.f32.mrf.mxu0 }
 0x42c   :  { %v3687_v47 = vadd.f32 %v3686_v24, %v3487_v42  ;;  %v3691_v49 = vmax.f32 %v3685_v44, 0.0 }
 0x42d   :  { %v3688_v50 = vpop.f32.mrf.mxu0 }
 0x42e   :  { %v3692_v34 = vmax.f32 %v3687_v47, 0.0  ;;  %v3693_v18 = vpack.c.bf16 %v3691_v49, %v3691_v49 }
 0x42f   :  { %v3689_v52 = vpop.f32.mrf.mxu0 }
 0x430   :  { %v3694_v55 = vpack.c.bf16 %v3692_v34, %v3692_v34 }
 0x432   :  { %3862 = vmatprep.mubr.bf16.mxu1 %v3694_v55 }
 0x433   :  { %3863 = vmatmul.mubr.bf16.vlgmr.msra.gmra.mxu1 %v3693_v18 }
 0x4f3   :  { %v4417_v56 = vpop.f32.mrf.mxu1 }
 0x4f5   :  { %v4418_v60 = vpop.f32.mrf.mxu1 }
 0x4f6   :  { %v4419_v61 = vadd.f32 %v4418_v60, %v4417_v56 }
 0x4f7   :  { %v4420_v62 = vpop.f32.mrf.mxu1 }
 0x4f8   :  { %v3865_v46 = vadd.f32 %v4419_v61, %v4339_v57 }
 0x4f9   :  { %v4421_v63 = vpop.f32.mrf.mxu1 }
 0x4fa   :  { %v4356_v51 = vmul.f32 -1.442695, %v3865_v46 }
 0x4fc   :  { %4637 = vpow2.f32 %v4356_v51 }
 0x509   :  { %v4638_v0 = vpop.eup %4637 }
 0x50a   :  { %v3873_v1 = vadd.f32 1.0, %v4638_v0 }
 0x50c   :  { %4639 = vrcp.f32 %v3873_v1 }
 0x519   :  { %v4640_v2 = vpop.eup %4639 }
 0x51a   :  { %3876 = vst [vmem:[%s5027_s9] sm:$0xff] %v4640_v2 }
 0x51b   :  { %3881 = vsyncpa [#allocation3], 1 }
 0x51c   :  { %3882 = vsyncpa [#allocation5], 1 }
 0x51d   :  { %3883 = vsyncpa [#allocation8], 1 }
 0x51e   :  { %3884 = vsyncpa [#allocation11], 1 }
 0x51f   :  { %3885 = vsyncpa [#allocation14], 1 }

</bundles_post_ra>
